<compile_context>
chip_gen: v6e
topology: v6e:2x2x1
jax: 0.10.0
libtpu: 0.0.40
codegen_flags: <defaults>
</compile_context>

<pallas_src>
import functools

import numpy as np
import jax
import jax.numpy as jnp
from jax.experimental import pallas as pl
from jax.experimental.pallas import tpu as pltpu

EPS = 1e-5
GROUPS = 2  # the module spec is nn.GroupNorm(2, channels)


def _group_norm_silu(yd, gamma_t, beta_t, m0, n):
    """GroupNorm(2) + SiLU on a lane-dense activation yd: (H, W*C).

    m0: (1, W*C) float mask of group 0 lanes; n: elements per group (H*W*C/2).
    """
    s = jnp.sum(yd, axis=0, keepdims=True)            # (1, W*C) sublane reduce
    s2 = jnp.sum(yd * yd, axis=0, keepdims=True)      # (1, W*C)

    sum_all = jnp.sum(s)
    sq_all = jnp.sum(s2)
    sum0 = jnp.sum(s * m0)
    sq0 = jnp.sum(s2 * m0)
    sum1 = sum_all - sum0
    sq1 = sq_all - sq0

    mean0 = sum0 / n
    mean1 = sum1 / n
    var0 = sq0 / n - mean0 * mean0
    var1 = sq1 / n - mean1 * mean1
    inv0 = jax.lax.rsqrt(var0 + EPS)
    inv1 = jax.lax.rsqrt(var1 + EPS)

    m1 = 1.0 - m0
    scale = (m0 * inv0 + m1 * inv1) * gamma_t          # fold affine
    shift = (m0 * (-mean0 * inv0) + m1 * (-mean1 * inv1)) * gamma_t + beta_t
    yn = yd * scale + shift
    return yn * jax.nn.sigmoid(yn)                     # SiLU


def _conv3x3_banded(xpad_d, wb_ref, bias_t, H):
    """xpad_d: (H+2, W*C) H-padded input; wb_ref: (3, W*C, W*C) SAME bands."""
    acc = jnp.dot(xpad_d[0:H, :], wb_ref[0],
                  preferred_element_type=jnp.float32)
    acc = acc + jnp.dot(xpad_d[1:H + 1, :], wb_ref[1],
                        preferred_element_type=jnp.float32)
    acc = acc + jnp.dot(xpad_d[2:H + 2, :], wb_ref[2],
                        preferred_element_type=jnp.float32)
    return acc + bias_t


def residual_block_kernel(x_ref, wb1_ref, b1_ref, g1_ref, be1_ref,
                          wb2_ref, b2_ref, g2_ref, be2_ref, m0_ref,
                          o_ref, *, n_per_group):
    H = o_ref.shape[1]
    WC = o_ref.shape[2]                      # W * C (lane-dense width, = 128)

    xd = x_ref[0].astype(jnp.float32)        # (H+2, W*C)
    m0 = m0_ref[...]                         # (1, W*C) group-0 mask

    # stage 1: conv -> GN -> SiLU (all lane-dense, no scratch)
    y = _conv3x3_banded(xd, wb1_ref, b1_ref[...], H)
    y = _group_norm_silu(y, g1_ref[...], be1_ref[...], m0, n_per_group)

    # re-pad the intermediate in H only (cheap sublane-direction concat)
    zrow = jnp.zeros((1, WC), jnp.float32)
    ypad = jnp.concatenate([zrow, y, zrow], axis=0)

    # stage 2: conv -> GN -> SiLU
    y2 = _conv3x3_banded(ypad, wb2_ref, b2_ref[...], H)
    y2 = _group_norm_silu(y2, g2_ref[...], be2_ref[...], m0, n_per_group)

    # lane-dense (W*C wide) unmasked store
    o_ref[...] = y2.reshape(1, H, WC).astype(o_ref.dtype)


def _banded_weights(w_oihw, W, C):
    """OIHW 3x3 conv weight -> 3 SAME-padded banded matrices (W*C, W*C), one per kh.

    bands[kh][a*C + i, w*C + o] = w[o, i, kh, kw] where a == w + kw - 1 (clipped
    at the left/right W edges), so no W-direction input padding is needed.
    """
    w_hwio = jnp.transpose(w_oihw, (2, 3, 1, 0)).astype(jnp.float32)  # (3,3,C,C)
    shift = np.zeros((3, W, W), np.float32)
    for kw in range(3):
        off = kw - 1
        for w in range(W):
            a = w + off
            if 0 <= a < W:
                shift[kw, a, w] = 1.0
    bands = jnp.einsum('kaw,hkio->haiwo', jnp.asarray(shift), w_hwio)
    return bands.reshape(3, W * C, W * C)


def residual_block(x_nchw, params):
    B, C, H, W = x_nchw.shape
    WC = W * C
    Cg = C // GROUPS

    # NCHW -> NHWC, zero-pad H by 1 only, flatten (W, C) into a lane-dense last dim
    # TODO(synk): keep the model in this (B, H, W*C) layout to drop these transposes.
    x_nhwc = jnp.transpose(x_nchw, (0, 2, 3, 1))
    x_pad = jnp.pad(x_nhwc, ((0, 0), (1, 1), (0, 0), (0, 0)))
    x_d = x_pad.reshape(B, H + 2, WC).astype(jnp.float32)

    wb1 = _banded_weights(params["w1"], W, C)
    wb2 = _banded_weights(params["w2"], W, C)

    def tile_c(v):  # per-channel vector -> lane-dense (1, W*C)
        return jnp.tile(jnp.asarray(v, jnp.float32).reshape(1, C), (1, W))

    b1t, g1t, be1t = tile_c(params["b1"]), tile_c(params["gn1_w"]), tile_c(params["gn1_b"])
    b2t, g2t, be2t = tile_c(params["b2"]), tile_c(params["gn2_w"]), tile_c(params["gn2_b"])
    m0 = tile_c((np.arange(C) // Cg == 0).astype(np.float32))   # group-0 lane mask

    vec_spec = pl.BlockSpec((1, WC), lambda b: (0, 0))
    w_spec = pl.BlockSpec((3, WC, WC), lambda b: (0, 0, 0))
    # TODO(synk): pipeline_mode=pl.Buffered(1) on these constant-index blocks would
    # halve their VMEM footprint at production C; negligible at C=8.

    out_d = pl.pallas_call(
        functools.partial(residual_block_kernel,
                          n_per_group=float(H * W * Cg)),
        out_shape=jax.ShapeDtypeStruct((B, H, WC), x_nchw.dtype),
        grid_spec=pltpu.PrefetchScalarGridSpec(
            num_scalar_prefetch=0,
            grid=(B,),
            in_specs=[
                pl.BlockSpec((1, H + 2, WC), lambda b: (b, 0, 0)),
                w_spec, vec_spec, vec_spec, vec_spec,
                w_spec, vec_spec, vec_spec, vec_spec,
                vec_spec,
            ],
            out_specs=pl.BlockSpec((1, H, WC), lambda b: (b, 0, 0)),
        ),
        compiler_params=pltpu.CompilerParams(
            dimension_semantics=("parallel",)),
    )(x_d, wb1, b1t, g1t, be1t, wb2, b2t, g2t, be2t, m0)

    # (B, H, W*C) -> NHWC -> NCHW
    return jnp.transpose(out_d.reshape(B, H, W, C), (0, 3, 1, 2))


# ---------------- pure-JAX reference (NCHW, mirrors the PyTorch module) ------
def _gn_ref(x, gamma, beta):
    B, C, H, W = x.shape
    xg = x.reshape(B, GROUPS, C // GROUPS, H, W)
    m = xg.mean(axis=(2, 3, 4), keepdims=True)
    v = ((xg - m) ** 2).mean(axis=(2, 3, 4), keepdims=True)
    xn = ((xg - m) / jnp.sqrt(v + EPS)).reshape(B, C, H, W)
    return xn * gamma.reshape(1, C, 1, 1) + beta.reshape(1, C, 1, 1)


def _conv_ref(x, w, b):
    y = jax.lax.conv_general_dilated(
        x, w, window_strides=(1, 1), padding=((1, 1), (1, 1)),
        dimension_numbers=("NCHW", "OIHW", "NCHW"))
    return y + b.reshape(1, -1, 1, 1)


def residual_block_ref(x, p):
    y = _conv_ref(x, p["w1"], p["b1"])
    y = jax.nn.silu(_gn_ref(y, p["gn1_w"], p["gn1_b"]))
    y = _conv_ref(y, p["w2"], p["b2"])
    y = jax.nn.silu(_gn_ref(y, p["gn2_w"], p["gn2_b"]))
    return y


if __name__ == "__main__":
    B, C, H, W = 2, 8, 16, 16
    key = jax.random.PRNGKey(0)
    kx, k1, k2, k3, k4, k5, k6, k7, k8 = jax.random.split(key, 9)

    x = jax.random.normal(kx, (B, C, H, W), jnp.float32)
    params = {
        "w1": 0.1 * jax.random.normal(k1, (C, C, 3, 3), jnp.float32),
        "b1": 0.1 * jax.random.normal(k2, (C,), jnp.float32),
        "gn1_w": 1.0 + 0.1 * jax.random.normal(k3, (C,), jnp.float32),
        "gn1_b": 0.1 * jax.random.normal(k4, (C,), jnp.float32),
        "w2": 0.1 * jax.random.normal(k5, (C, C, 3, 3), jnp.float32),
        "b2": 0.1 * jax.random.normal(k6, (C,), jnp.float32),
        "gn2_w": 1.0 + 0.1 * jax.random.normal(k7, (C,), jnp.float32),
        "gn2_b": 0.1 * jax.random.normal(k8, (C,), jnp.float32),
    }

    out = jax.block_until_ready(residual_block(x, params))
    ref = jax.block_until_ready(residual_block_ref(x, params))

    assert out.shape == (B, C, H, W)
    assert jnp.allclose(out, ref, atol=1e-4, rtol=1e-4), (
        float(jnp.max(jnp.abs(out - ref))))
    print("KERNEL_OK")
</pallas_src>

<mosaic_0001>
module attributes {stable_mosaic.version = 11 : i64} {
  func.func @residual_block_kernel(%arg0: i32, %arg1: memref<1x18x128xf32, #tpu.memory_space<vmem>>, %arg2: memref<3x128x128xf32, #tpu.memory_space<vmem>>, %arg3: memref<1x128xf32, #tpu.memory_space<vmem>>, %arg4: memref<1x128xf32, #tpu.memory_space<vmem>>, %arg5: memref<1x128xf32, #tpu.memory_space<vmem>>, %arg6: memref<3x128x128xf32, #tpu.memory_space<vmem>>, %arg7: memref<1x128xf32, #tpu.memory_space<vmem>>, %arg8: memref<1x128xf32, #tpu.memory_space<vmem>>, %arg9: memref<1x128xf32, #tpu.memory_space<vmem>>, %arg10: memref<1x128xf32, #tpu.memory_space<vmem>>, %arg11: memref<1x16x128xf32, #tpu.memory_space<vmem>>) attributes {dimension_semantics = [#tpu.dimension_semantics<parallel>], iteration_bounds = array<i64: 2>, scalar_prefetch = 0 : i64, scratch_operands = 0 : i64, tpu.core_type = #tpu.core_type<tc>, window_params = [{transform_indices = @transform_0, window_bounds = array<i64: 1, 18, 128>}, {pipeline_mode = #tpu.pipeline_mode<synchronous>, transform_indices = @transform_1, window_bounds = array<i64: 3, 128, 128>}, {pipeline_mode = #tpu.pipeline_mode<synchronous>, transform_indices = @transform_2, window_bounds = array<i64: 1, 128>}, {pipeline_mode = #tpu.pipeline_mode<synchronous>, transform_indices = @transform_3, window_bounds = array<i64: 1, 128>}, {pipeline_mode = #tpu.pipeline_mode<synchronous>, transform_indices = @transform_4, window_bounds = array<i64: 1, 128>}, {pipeline_mode = #tpu.pipeline_mode<synchronous>, transform_indices = @transform_5, window_bounds = array<i64: 3, 128, 128>}, {pipeline_mode = #tpu.pipeline_mode<synchronous>, transform_indices = @transform_6, window_bounds = array<i64: 1, 128>}, {pipeline_mode = #tpu.pipeline_mode<synchronous>, transform_indices = @transform_7, window_bounds = array<i64: 1, 128>}, {pipeline_mode = #tpu.pipeline_mode<synchronous>, transform_indices = @transform_8, window_bounds = array<i64: 1, 128>}, {pipeline_mode = #tpu.pipeline_mode<synchronous>, transform_indices = @transform_9, window_bounds = array<i64: 1, 128>}, {transform_indices = @transform_10, window_bounds = array<i64: 1, 16, 128>}]} {
    %c0 = arith.constant 0 : index
    %c0_0 = arith.constant 0 : index
    %c0_1 = arith.constant 0 : index
    %0 = vector.load %arg1[%c0, %c0_0, %c0_1] : memref<1x18x128xf32, #tpu.memory_space<vmem>>, vector<1x18x128xf32>
    %1 = vector.shape_cast %0 : vector<1x18x128xf32> to vector<18x128xf32>
    %c0_2 = arith.constant 0 : index
    %c0_3 = arith.constant 0 : index
    %2 = vector.load %arg10[%c0_2, %c0_3] : memref<1x128xf32, #tpu.memory_space<vmem>>, vector<1x128xf32>
    %c0_4 = arith.constant 0 : index
    %c0_5 = arith.constant 0 : index
    %3 = vector.load %arg3[%c0_4, %c0_5] : memref<1x128xf32, #tpu.memory_space<vmem>>, vector<1x128xf32>
    %4 = vector.extract_strided_slice %1 {offsets = [0, 0], sizes = [16, 128], strides = [1, 1]} : vector<18x128xf32> to vector<16x128xf32>
    %c0_6 = arith.constant 0 : index
    %c0_7 = arith.constant 0 : index
    %c0_8 = arith.constant 0 : index
    %5 = vector.load %arg2[%c0_6, %c0_7, %c0_8] : memref<3x128x128xf32, #tpu.memory_space<vmem>>, vector<1x128x128xf32>
    %6 = vector.shape_cast %5 : vector<1x128x128xf32> to vector<128x128xf32>
    %cst = arith.constant dense<0.000000e+00> : vector<16x128xf32>
    %7 = tpu.matmul %4, %6, %cst {dimension_numbers = #tpu.dot_dimension_numbers<[1], [0], [0], [1], [0, 0, 1, 1], [], []>} : vector<16x128xf32>, vector<128x128xf32>, vector<16x128xf32> -> vector<16x128xf32>
    %8 = vector.extract_strided_slice %1 {offsets = [1, 0], sizes = [16, 128], strides = [1, 1]} : vector<18x128xf32> to vector<16x128xf32>
    %c1 = arith.constant 1 : index
    %c0_9 = arith.constant 0 : index
    %c0_10 = arith.constant 0 : index
    %9 = vector.load %arg2[%c1, %c0_9, %c0_10] : memref<3x128x128xf32, #tpu.memory_space<vmem>>, vector<1x128x128xf32>
    %10 = vector.shape_cast %9 : vector<1x128x128xf32> to vector<128x128xf32>
    %cst_11 = arith.constant dense<0.000000e+00> : vector<16x128xf32>
    %11 = tpu.matmul %8, %10, %cst_11 {dimension_numbers = #tpu.dot_dimension_numbers<[1], [0], [0], [1], [0, 0, 1, 1], [], []>} : vector<16x128xf32>, vector<128x128xf32>, vector<16x128xf32> -> vector<16x128xf32>
    %12 = arith.addf %7, %11 : vector<16x128xf32>
    %13 = vector.extract_strided_slice %1 {offsets = [2, 0], sizes = [16, 128], strides = [1, 1]} : vector<18x128xf32> to vector<16x128xf32>
    %c2 = arith.constant 2 : index
    %c0_12 = arith.constant 0 : index
    %c0_13 = arith.constant 0 : index
    %14 = vector.load %arg2[%c2, %c0_12, %c0_13] : memref<3x128x128xf32, #tpu.memory_space<vmem>>, vector<1x128x128xf32>
    %15 = vector.shape_cast %14 : vector<1x128x128xf32> to vector<128x128xf32>
    %cst_14 = arith.constant dense<0.000000e+00> : vector<16x128xf32>
    %16 = tpu.matmul %13, %15, %cst_14 {dimension_numbers = #tpu.dot_dimension_numbers<[1], [0], [0], [1], [0, 0, 1, 1], [], []>} : vector<16x128xf32>, vector<128x128xf32>, vector<16x128xf32> -> vector<16x128xf32>
    %17 = arith.addf %12, %16 : vector<16x128xf32>
    %18 = vector.broadcast %3 : vector<1x128xf32> to vector<16x128xf32>
    %19 = arith.addf %17, %18 : vector<16x128xf32>
    %c0_15 = arith.constant 0 : index
    %c0_16 = arith.constant 0 : index
    %20 = vector.load %arg4[%c0_15, %c0_16] : memref<1x128xf32, #tpu.memory_space<vmem>>, vector<1x128xf32>
    %c0_17 = arith.constant 0 : index
    %c0_18 = arith.constant 0 : index
    %21 = vector.load %arg5[%c0_17, %c0_18] : memref<1x128xf32, #tpu.memory_space<vmem>>, vector<1x128xf32>
    %cst_19 = arith.constant dense<0.000000e+00> : vector<128xf32>
    %22 = vector.multi_reduction <add>, %19, %cst_19 [0] : vector<16x128xf32> to vector<128xf32>
    %23 = vector.shape_cast %22 : vector<128xf32> to vector<1x128xf32>
    %24 = arith.mulf %19, %19 : vector<16x128xf32>
    %cst_20 = arith.constant dense<0.000000e+00> : vector<128xf32>
    %25 = vector.multi_reduction <add>, %24, %cst_20 [0] : vector<16x128xf32> to vector<128xf32>
    %26 = vector.shape_cast %25 : vector<128xf32> to vector<1x128xf32>
    %27 = vector.shape_cast %23 : vector<1x128xf32> to vector<1x1x128xf32>
    %cst_21 = arith.constant dense<0.000000e+00> : vector<1xf32>
    %28 = vector.multi_reduction <add>, %27, %cst_21 [1, 2] : vector<1x1x128xf32> to vector<1xf32>
    %29 = vector.shape_cast %28 : vector<1xf32> to vector<1x1x1xf32>
    %30 = vector.extract %29[0, 0, 0] : f32 from vector<1x1x1xf32>
    %31 = vector.shape_cast %26 : vector<1x128xf32> to vector<1x1x128xf32>
    %cst_22 = arith.constant dense<0.000000e+00> : vector<1xf32>
    %32 = vector.multi_reduction <add>, %31, %cst_22 [1, 2] : vector<1x1x128xf32> to vector<1xf32>
    %33 = vector.shape_cast %32 : vector<1xf32> to vector<1x1x1xf32>
    %34 = vector.extract %33[0, 0, 0] : f32 from vector<1x1x1xf32>
    %35 = arith.mulf %23, %2 : vector<1x128xf32>
    %36 = vector.shape_cast %35 : vector<1x128xf32> to vector<1x1x128xf32>
    %cst_23 = arith.constant dense<0.000000e+00> : vector<1xf32>
    %37 = vector.multi_reduction <add>, %36, %cst_23 [1, 2] : vector<1x1x128xf32> to vector<1xf32>
    %38 = vector.shape_cast %37 : vector<1xf32> to vector<1x1x1xf32>
    %39 = vector.extract %38[0, 0, 0] : f32 from vector<1x1x1xf32>
    %40 = arith.mulf %26, %2 : vector<1x128xf32>
    %41 = vector.shape_cast %40 : vector<1x128xf32> to vector<1x1x128xf32>
    %cst_24 = arith.constant dense<0.000000e+00> : vector<1xf32>
    %42 = vector.multi_reduction <add>, %41, %cst_24 [1, 2] : vector<1x1x128xf32> to vector<1xf32>
    %43 = vector.shape_cast %42 : vector<1xf32> to vector<1x1x1xf32>
    %44 = vector.extract %43[0, 0, 0] : f32 from vector<1x1x1xf32>
    %45 = arith.subf %30, %39 : f32
    %46 = arith.subf %34, %44 : f32
    %cst_25 = arith.constant 1.024000e+03 : f32
    %47 = arith.divf %39, %cst_25 : f32
    %cst_26 = arith.constant 1.024000e+03 : f32
    %48 = arith.divf %45, %cst_26 : f32
    %cst_27 = arith.constant 1.024000e+03 : f32
    %49 = arith.divf %44, %cst_27 : f32
    %50 = arith.mulf %47, %47 : f32
    %51 = arith.subf %49, %50 : f32
    %cst_28 = arith.constant 1.024000e+03 : f32
    %52 = arith.divf %46, %cst_28 : f32
    %53 = arith.mulf %48, %48 : f32
    %54 = arith.subf %52, %53 : f32
    %cst_29 = arith.constant 9.99999974E-6 : f32
    %55 = arith.addf %51, %cst_29 : f32
    %56 = math.rsqrt %55 : f32
    %cst_30 = arith.constant 9.99999974E-6 : f32
    %57 = arith.addf %54, %cst_30 : f32
    %58 = math.rsqrt %57 : f32
    %cst_31 = arith.constant 1.000000e+00 : f32
    %59 = vector.broadcast %cst_31 : f32 to vector<1x128xf32>
    %60 = arith.subf %59, %2 : vector<1x128xf32>
    %61 = vector.broadcast %56 : f32 to vector<1x128xf32>
    %62 = arith.mulf %2, %61 : vector<1x128xf32>
    %63 = vector.broadcast %58 : f32 to vector<1x128xf32>
    %64 = arith.mulf %60, %63 : vector<1x128xf32>
    %65 = arith.addf %62, %64 : vector<1x128xf32>
    %66 = arith.mulf %65, %20 : vector<1x128xf32>
    %cst_32 = arith.constant 0.000000e+00 : f32
    %67 = arith.subf %cst_32, %47 : f32
    %68 = arith.mulf %67, %56 : f32
    %69 = vector.broadcast %68 : f32 to vector<1x128xf32>
    %70 = arith.mulf %2, %69 : vector<1x128xf32>
    %cst_33 = arith.constant 0.000000e+00 : f32
    %71 = arith.subf %cst_33, %48 : f32
    %72 = arith.mulf %71, %58 : f32
    %73 = vector.broadcast %72 : f32 to vector<1x128xf32>
    %74 = arith.mulf %60, %73 : vector<1x128xf32>
    %75 = arith.addf %70, %74 : vector<1x128xf32>
    %76 = arith.mulf %75, %20 : vector<1x128xf32>
    %77 = arith.addf %76, %21 : vector<1x128xf32>
    %78 = vector.broadcast %66 : vector<1x128xf32> to vector<16x128xf32>
    %79 = arith.mulf %19, %78 : vector<16x128xf32>
    %80 = vector.broadcast %77 : vector<1x128xf32> to vector<16x128xf32>
    %81 = arith.addf %79, %80 : vector<16x128xf32>
    %82 = arith.negf %81 : vector<16x128xf32>
    %83 = math.exp %82 : vector<16x128xf32>
    %cst_34 = arith.constant 1.000000e+00 : f32
    %84 = vector.broadcast %cst_34 : f32 to vector<16x128xf32>
    %85 = arith.addf %84, %83 : vector<16x128xf32>
    %86 = arith.divf %84, %85 : vector<16x128xf32>
    %87 = arith.mulf %81, %86 : vector<16x128xf32>
    %cst_35 = arith.constant 0.000000e+00 : f32
    %88 = vector.broadcast %cst_35 : f32 to vector<1x128xf32>
    %89 = tpu.concatenate %88, %87, %88 in 0 : vector<1x128xf32>, vector<16x128xf32>, vector<1x128xf32> -> vector<18x128xf32>
    %c0_36 = arith.constant 0 : index
    %c0_37 = arith.constant 0 : index
    %90 = vector.load %arg7[%c0_36, %c0_37] : memref<1x128xf32, #tpu.memory_space<vmem>>, vector<1x128xf32>
    %91 = vector.extract_strided_slice %89 {offsets = [0, 0], sizes = [16, 128], strides = [1, 1]} : vector<18x128xf32> to vector<16x128xf32>
    %c0_38 = arith.constant 0 : index
    %c0_39 = arith.constant 0 : index
    %c0_40 = arith.constant 0 : index
    %92 = vector.load %arg6[%c0_38, %c0_39, %c0_40] : memref<3x128x128xf32, #tpu.memory_space<vmem>>, vector<1x128x128xf32>
    %93 = vector.shape_cast %92 : vector<1x128x128xf32> to vector<128x128xf32>
    %cst_41 = arith.constant dense<0.000000e+00> : vector<16x128xf32>
    %94 = tpu.matmul %91, %93, %cst_41 {dimension_numbers = #tpu.dot_dimension_numbers<[1], [0], [0], [1], [0, 0, 1, 1], [], []>} : vector<16x128xf32>, vector<128x128xf32>, vector<16x128xf32> -> vector<16x128xf32>
    %95 = vector.extract_strided_slice %89 {offsets = [1, 0], sizes = [16, 128], strides = [1, 1]} : vector<18x128xf32> to vector<16x128xf32>
    %c1_42 = arith.constant 1 : index
    %c0_43 = arith.constant 0 : index
    %c0_44 = arith.constant 0 : index
    %96 = vector.load %arg6[%c1_42, %c0_43, %c0_44] : memref<3x128x128xf32, #tpu.memory_space<vmem>>, vector<1x128x128xf32>
    %97 = vector.shape_cast %96 : vector<1x128x128xf32> to vector<128x128xf32>
    %cst_45 = arith.constant dense<0.000000e+00> : vector<16x128xf32>
    %98 = tpu.matmul %95, %97, %cst_45 {dimension_numbers = #tpu.dot_dimension_numbers<[1], [0], [0], [1], [0, 0, 1, 1], [], []>} : vector<16x128xf32>, vector<128x128xf32>, vector<16x128xf32> -> vector<16x128xf32>
    %99 = arith.addf %94, %98 : vector<16x128xf32>
    %100 = vector.extract_strided_slice %89 {offsets = [2, 0], sizes = [16, 128], strides = [1, 1]} : vector<18x128xf32> to vector<16x128xf32>
    %c2_46 = arith.constant 2 : index
    %c0_47 = arith.constant 0 : index
    %c0_48 = arith.constant 0 : index
    %101 = vector.load %arg6[%c2_46, %c0_47, %c0_48] : memref<3x128x128xf32, #tpu.memory_space<vmem>>, vector<1x128x128xf32>
    %102 = vector.shape_cast %101 : vector<1x128x128xf32> to vector<128x128xf32>
    %cst_49 = arith.constant dense<0.000000e+00> : vector<16x128xf32>
    %103 = tpu.matmul %100, %102, %cst_49 {dimension_numbers = #tpu.dot_dimension_numbers<[1], [0], [0], [1], [0, 0, 1, 1], [], []>} : vector<16x128xf32>, vector<128x128xf32>, vector<16x128xf32> -> vector<16x128xf32>
    %104 = arith.addf %99, %103 : vector<16x128xf32>
    %105 = vector.broadcast %90 : vector<1x128xf32> to vector<16x128xf32>
    %106 = arith.addf %104, %105 : vector<16x128xf32>
    %c0_50 = arith.constant 0 : index
    %c0_51 = arith.constant 0 : index
    %107 = vector.load %arg8[%c0_50, %c0_51] : memref<1x128xf32, #tpu.memory_space<vmem>>, vector<1x128xf32>
    %c0_52 = arith.constant 0 : index
    %c0_53 = arith.constant 0 : index
    %108 = vector.load %arg9[%c0_52, %c0_53] : memref<1x128xf32, #tpu.memory_space<vmem>>, vector<1x128xf32>
    %cst_54 = arith.constant dense<0.000000e+00> : vector<128xf32>
    %109 = vector.multi_reduction <add>, %106, %cst_54 [0] : vector<16x128xf32> to vector<128xf32>
    %110 = vector.shape_cast %109 : vector<128xf32> to vector<1x128xf32>
    %111 = arith.mulf %106, %106 : vector<16x128xf32>
    %cst_55 = arith.constant dense<0.000000e+00> : vector<128xf32>
    %112 = vector.multi_reduction <add>, %111, %cst_55 [0] : vector<16x128xf32> to vector<128xf32>
    %113 = vector.shape_cast %112 : vector<128xf32> to vector<1x128xf32>
    %114 = vector.shape_cast %110 : vector<1x128xf32> to vector<1x1x128xf32>
    %cst_56 = arith.constant dense<0.000000e+00> : vector<1xf32>
    %115 = vector.multi_reduction <add>, %114, %cst_56 [1, 2] : vector<1x1x128xf32> to vector<1xf32>
    %116 = vector.shape_cast %115 : vector<1xf32> to vector<1x1x1xf32>
    %117 = vector.extract %116[0, 0, 0] : f32 from vector<1x1x1xf32>
    %118 = vector.shape_cast %113 : vector<1x128xf32> to vector<1x1x128xf32>
    %cst_57 = arith.constant dense<0.000000e+00> : vector<1xf32>
    %119 = vector.multi_reduction <add>, %118, %cst_57 [1, 2] : vector<1x1x128xf32> to vector<1xf32>
    %120 = vector.shape_cast %119 : vector<1xf32> to vector<1x1x1xf32>
    %121 = vector.extract %120[0, 0, 0] : f32 from vector<1x1x1xf32>
    %122 = arith.mulf %110, %2 : vector<1x128xf32>
    %123 = vector.shape_cast %122 : vector<1x128xf32> to vector<1x1x128xf32>
    %cst_58 = arith.constant dense<0.000000e+00> : vector<1xf32>
    %124 = vector.multi_reduction <add>, %123, %cst_58 [1, 2] : vector<1x1x128xf32> to vector<1xf32>
    %125 = vector.shape_cast %124 : vector<1xf32> to vector<1x1x1xf32>
    %126 = vector.extract %125[0, 0, 0] : f32 from vector<1x1x1xf32>
    %127 = arith.mulf %113, %2 : vector<1x128xf32>
    %128 = vector.shape_cast %127 : vector<1x128xf32> to vector<1x1x128xf32>
    %cst_59 = arith.constant dense<0.000000e+00> : vector<1xf32>
    %129 = vector.multi_reduction <add>, %128, %cst_59 [1, 2] : vector<1x1x128xf32> to vector<1xf32>
    %130 = vector.shape_cast %129 : vector<1xf32> to vector<1x1x1xf32>
    %131 = vector.extract %130[0, 0, 0] : f32 from vector<1x1x1xf32>
    %132 = arith.subf %117, %126 : f32
    %133 = arith.subf %121, %131 : f32
    %cst_60 = arith.constant 1.024000e+03 : f32
    %134 = arith.divf %126, %cst_60 : f32
    %cst_61 = arith.constant 1.024000e+03 : f32
    %135 = arith.divf %132, %cst_61 : f32
    %cst_62 = arith.constant 1.024000e+03 : f32
    %136 = arith.divf %131, %cst_62 : f32
    %137 = arith.mulf %134, %134 : f32
    %138 = arith.subf %136, %137 : f32
    %cst_63 = arith.constant 1.024000e+03 : f32
    %139 = arith.divf %133, %cst_63 : f32
    %140 = arith.mulf %135, %135 : f32
    %141 = arith.subf %139, %140 : f32
    %cst_64 = arith.constant 9.99999974E-6 : f32
    %142 = arith.addf %138, %cst_64 : f32
    %143 = math.rsqrt %142 : f32
    %cst_65 = arith.constant 9.99999974E-6 : f32
    %144 = arith.addf %141, %cst_65 : f32
    %145 = math.rsqrt %144 : f32
    %cst_66 = arith.constant 1.000000e+00 : f32
    %146 = vector.broadcast %cst_66 : f32 to vector<1x128xf32>
    %147 = arith.subf %146, %2 : vector<1x128xf32>
    %148 = vector.broadcast %143 : f32 to vector<1x128xf32>
    %149 = arith.mulf %2, %148 : vector<1x128xf32>
    %150 = vector.broadcast %145 : f32 to vector<1x128xf32>
    %151 = arith.mulf %147, %150 : vector<1x128xf32>
    %152 = arith.addf %149, %151 : vector<1x128xf32>
    %153 = arith.mulf %152, %107 : vector<1x128xf32>
    %cst_67 = arith.constant 0.000000e+00 : f32
    %154 = arith.subf %cst_67, %134 : f32
    %155 = arith.mulf %154, %143 : f32
    %156 = vector.broadcast %155 : f32 to vector<1x128xf32>
    %157 = arith.mulf %2, %156 : vector<1x128xf32>
    %cst_68 = arith.constant 0.000000e+00 : f32
    %158 = arith.subf %cst_68, %135 : f32
    %159 = arith.mulf %158, %145 : f32
    %160 = vector.broadcast %159 : f32 to vector<1x128xf32>
    %161 = arith.mulf %147, %160 : vector<1x128xf32>
    %162 = arith.addf %157, %161 : vector<1x128xf32>
    %163 = arith.mulf %162, %107 : vector<1x128xf32>
    %164 = arith.addf %163, %108 : vector<1x128xf32>
    %165 = vector.broadcast %153 : vector<1x128xf32> to vector<16x128xf32>
    %166 = arith.mulf %106, %165 : vector<16x128xf32>
    %167 = vector.broadcast %164 : vector<1x128xf32> to vector<16x128xf32>
    %168 = arith.addf %166, %167 : vector<16x128xf32>
    %169 = arith.negf %168 : vector<16x128xf32>
    %170 = math.exp %169 : vector<16x128xf32>
    %cst_69 = arith.constant 1.000000e+00 : f32
    %171 = vector.broadcast %cst_69 : f32 to vector<16x128xf32>
    %172 = arith.addf %171, %170 : vector<16x128xf32>
    %173 = arith.divf %171, %172 : vector<16x128xf32>
    %174 = arith.mulf %168, %173 : vector<16x128xf32>
    %175 = vector.shape_cast %174 : vector<16x128xf32> to vector<1x16x128xf32>
    %c0_70 = arith.constant 0 : index
    %c0_71 = arith.constant 0 : index
    %c0_72 = arith.constant 0 : index
    %176 = vector.load %arg11[%c0_70, %c0_71, %c0_72] : memref<1x16x128xf32, #tpu.memory_space<vmem>>, vector<1x16x128xf32>
    tpu.vector_store %arg11[%c0_70, %c0_71, %c0_72], %175 {strides = array<i32>} : memref<1x16x128xf32, #tpu.memory_space<vmem>>, vector<1x16x128xf32>,
    return
  }
  func.func @transform_0(%arg0: i32) -> (i32, i32, i32) {
    %c0_i32 = arith.constant 0 : i32
    %c0_i32_0 = arith.constant 0 : i32
    %c0_i32_1 = arith.constant 0 : i32
    return %arg0, %c0_i32, %c0_i32_0 : i32, i32, i32
  }
  func.func @transform_1(%arg0: i32) -> (i32, i32, i32) {
    %c0_i32 = arith.constant 0 : i32
    %c0_i32_0 = arith.constant 0 : i32
    %c0_i32_1 = arith.constant 0 : i32
    %c0_i32_2 = arith.constant 0 : i32
    return %c0_i32, %c0_i32_0, %c0_i32_1 : i32, i32, i32
  }
  func.func @transform_2(%arg0: i32) -> (i32, i32) {
    %c0_i32 = arith.constant 0 : i32
    %c0_i32_0 = arith.constant 0 : i32
    %c0_i32_1 = arith.constant 0 : i32
    return %c0_i32, %c0_i32_0 : i32, i32
  }
  func.func @transform_3(%arg0: i32) -> (i32, i32) {
    %c0_i32 = arith.constant 0 : i32
    %c0_i32_0 = arith.constant 0 : i32
    %c0_i32_1 = arith.constant 0 : i32
    return %c0_i32, %c0_i32_0 : i32, i32
  }
  func.func @transform_4(%arg0: i32) -> (i32, i32) {
    %c0_i32 = arith.constant 0 : i32
    %c0_i32_0 = arith.constant 0 : i32
    %c0_i32_1 = arith.constant 0 : i32
    return %c0_i32, %c0_i32_0 : i32, i32
  }
  func.func @transform_5(%arg0: i32) -> (i32, i32, i32) {
    %c0_i32 = arith.constant 0 : i32
    %c0_i32_0 = arith.constant 0 : i32
    %c0_i32_1 = arith.constant 0 : i32
    %c0_i32_2 = arith.constant 0 : i32
    return %c0_i32, %c0_i32_0, %c0_i32_1 : i32, i32, i32
  }
  func.func @transform_6(%arg0: i32) -> (i32, i32) {
    %c0_i32 = arith.constant 0 : i32
    %c0_i32_0 = arith.constant 0 : i32
    %c0_i32_1 = arith.constant 0 : i32
    return %c0_i32, %c0_i32_0 : i32, i32
  }
  func.func @transform_7(%arg0: i32) -> (i32, i32) {
    %c0_i32 = arith.constant 0 : i32
    %c0_i32_0 = arith.constant 0 : i32
    %c0_i32_1 = arith.constant 0 : i32
    return %c0_i32, %c0_i32_0 : i32, i32
  }
  func.func @transform_8(%arg0: i32) -> (i32, i32) {
    %c0_i32 = arith.constant 0 : i32
    %c0_i32_0 = arith.constant 0 : i32
    %c0_i32_1 = arith.constant 0 : i32
    return %c0_i32, %c0_i32_0 : i32, i32
  }
  func.func @transform_9(%arg0: i32) -> (i32, i32) {
    %c0_i32 = arith.constant 0 : i32
    %c0_i32_0 = arith.constant 0 : i32
    %c0_i32_1 = arith.constant 0 : i32
    return %c0_i32, %c0_i32_0 : i32, i32
  }
  func.func @transform_10(%arg0: i32) -> (i32, i32, i32) {
    %c0_i32 = arith.constant 0 : i32
    %c0_i32_0 = arith.constant 0 : i32
    %c0_i32_1 = arith.constant 0 : i32
    return %arg0, %c0_i32, %c0_i32_0 : i32, i32, i32
  }
}

</mosaic_0001>

<bundles_post_ra>
// kernel: tpu_custom_call.1
= control target key start
LH: loop header
LB: loop body
LE: loop exit
PB: predicated region body
PF: predicated region fallthrough
CT: control target
= control target key end

     0   :  { %s2279_s0 = inlined_call_operand.vmem [shape: f32[2,18,128], index: 0, kind: input, shape index: {}]   ;;  %s2280_s1 = inlined_call_operand.hbm [shape: f32[3,128,128], index: 1, kind: input, shape index: {}]   ;;  %s2281_s2 = inlined_call_operand.vmem [shape: f32[1,128], index: 2, kind: input, shape index: {}]   ;;  %s2282_s3 = inlined_call_operand.vmem [shape: f32[1,128], index: 3, kind: input, shape index: {}]   ;;  %s2283_s4 = inlined_call_operand.vmem [shape: f32[1,128], index: 4, kind: input, shape index: {}]   ;;  %s2284_s5 = inlined_call_operand.hbm [shape: f32[3,128,128], index: 5, kind: input, shape index: {}]   ;;  %s2285_s6 = inlined_call_operand.vmem [shape: f32[1,128], index: 6, kind: input, shape index: {}]   ;;  %s2286_s7 = inlined_call_operand.vmem [shape: f32[1,128], index: 7, kind: input, shape index: {}]   ;;  %s2287_s8 = inlined_call_operand.vmem [shape: f32[1,128], index: 8, kind: input, shape index: {}]   ;;  %s2288_s9 = inlined_call_operand.vmem [shape: f32[1,128], index: 9, kind: input, shape index: {}]   ;;  %s2289_s10 = inlined_call_operand.hbm [shape: f32[2,16,128], index: 10, kind: output, shape index: {}]  }
   0x1   :  { %2291 = sst [smem:[#allocation11_spill]] %s2279_s0 }
   0x2   :  { %2292 = sst [smem:[#allocation12_spill]] %s2280_s1 }
   0x3   :  { %2293 = sst [smem:[#allocation13_spill]] %s2281_s2 }
   0x4   :  { %2294 = sst [smem:[#allocation14_spill]] %s2282_s3 }
   0x5   :  { %2295 = sst [smem:[#allocation15_spill]] %s2283_s4 }
   0x6   :  { %2296 = sst [smem:[#allocation16_spill]] %s2284_s5 }
   0x7   :  { %15 = vsyncpa [#allocation3], 0 }
   0x8   :  { %16 = vsyncpa [#allocation6], 0 }
   0x9   :  { %17 = vsyncpa [#allocation4], 0 }
   0xa   :  { %19 = vsyncpa [#allocation4 + $0x1], 0  ;;  %s2016_s13 = smov 0   ;;  %s2018_s14 = smov 0  }
   0xb   :  { %s2020_s15 = smov 0   ;;  %s2022_s16 = smov 0  }
   0xc LB: > { %s2037_s17 = sadd.s32 4294967295, %s1952_s16   ;;  %s1377_s18 = sadd.s32 4294967294, %s1952_s16   ;;  %s1952_s16 = sphi %s2022_s16, %s2315_s16   ;;  %s1948_s15 = sphi %s2020_s15, %s2314_s15   ;;  %s1944_s14 = sphi %s2018_s14, %s2313_s14   ;;  %s1940_s13 = sphi %s2016_s13, %s2312_s13  }
   0xd   : > { %s2041_s19 = sadd.s32 1, %s1952_s16   ;;  %s247_s20 = sadd.s32 1, %s1948_s15 }
   0xe   : > { %s244_s21 = ssub.s32 %s1952_s16, %s2041_s19  ;;  %p257_p0 = scmp.ne.s32.totalorder %s1948_s15, %s1944_s14 }
   0xf   : > { %p245_p1 = scmp.eq.s32.totalorder %s244_s21, 0  ;;  %p258_p2 = scmp.eq.s32.totalorder %s2037_s17, 1 }
  0x10   : > { %p263_p3 = scmp.ne.s32.totalorder %s1944_s14, %s1940_s13  ;;  %p264_p4 = scmp.eq.s32.totalorder %s1377_s18, 1 }
  0x11   : > { %s2052_s22 = scalar_select %p245_p1, %s1948_s15, %s247_s20  }
  0x12   : > { %p2054_p5 = por %p258_p2, %p257_p0  ;;  %p2058_p6 = por %p264_p4, %p263_p3 }
  0x13   : > { %p1378_p7 = scmp.ge.s32.totalorder %s1952_s16, 1  ;;  %p271_p8 = scmp.lt.s32.totalorder %s1952_s16, 3 }
  0x14   : > { %s2298_s24 = scalar_select %p2058_p6, 1, 0 }
  0x15   : > { %p2290_p9 = scmp.eq.s32.totalorder %s2037_s17, 0  ;;  %p2065_p10 = pnand %p1378_p7, %p271_p8 }
  0x16   : > { %s1954_s26 = smov [#allocation2]   ;;  %s1955_s29 = smov [#allocation5]  }
  0x17   : > { %s283_s27 = sshll.u32 %s1954_s26, 4  ;;  %p1754_p11 = pneg %p2065_p10  ;;  %s284_s27 = int_to_ptr.vmem [resolvable:$true] %s283_s27 }
  0x18   : > { %s305_s30 = sshll.u32 %s1955_s29, 4  ;;  %s1843_s11 = scalar_lea.vmem %s284_s27, 6144  ;;  %s306_s30 = int_to_ptr.vmem [resolvable:$true] %s305_s30 }
  0x19   : > { %p2073_p12 = pnand %p2290_p9, %p1754_p11  ;;  %p1844_p0 = scmp.ne.s32.totalorder %s284_s27, %s1843_s11 }
  0x1a   : > { %p1851_p3 = scmp.lt.s32.totalorder %s284_s27, %s284_s27  ;;  %p1852_p4 = scmp.lt.s32.totalorder %s1843_s11, %s1843_s11 }
  0x1b   : > { %p1834_p13 = pneg %p2073_p12 }
  0x1c   : > { %p1853_p7 = por %p1852_p4, %p1851_p3 }
  0x1d   : > { %p1846_p1 = pnand %p1844_p0, %p1834_p13 }
  0x1f   : > { %p1847_p2 = pneg %p1846_p1 }
  0x21   : > { %p1854_p8 = pnand %p1853_p7, %p1847_p2 }
  0x23   : > { %1857 = shalt.err (!%p1854_p8)
}
  0x24   : > { %s1956_s12 = smov 128   ;;  %s1957_s18 = smov 8  }
  0x25   : > { %s2301_s1 = sld [smem:[#allocation12_spill]]  ;;  %s1869_s26 = scalar_lea.vmem %s306_s30, 6144 }
  0x26   : > { %p1870_p11 = scmp.ne.s32.totalorder %s306_s30, %s1869_s26  ;;  %p1877_p9 = scmp.lt.s32.totalorder %s306_s30, %s306_s30 }
  0x27   : > { %p1878_p6 = scmp.lt.s32.totalorder %s1869_s26, %s1869_s26 }
  0x28   : > { %p1872_p0 = pnand %p1870_p11, %p1834_p13 }
  0x29   : > { %p1879_p3 = por %p1878_p6, %p1877_p9 }
  0x2a   : > { %p1873_p1 = pneg %p1872_p0 }
  0x2b   : > { %1757 = dma.hbm_to_vmem [thread:$0]  (!%p2073_p12), %s2301_s1, 6144, %s284_s27, [#allocation3], %s1956_s12, %s1956_s12, %s1957_s18  }
  0x2c   : > { %p1880_p2 = pnand %p1879_p3, %p1873_p1 }
  0x2e   : > { %1883 = shalt.err (!%p1880_p2)
}
  0x2f   : > { %s2302_s5 = sld [smem:[#allocation16_spill]]  ;;  %p2303_p4 = scmp.eq.s32.totalorder (!%p2065_p10), %s2037_s17, 0 }
  0x31   : > { %341 = sbr.rel (%p2065_p10) target bundleno = 1269 (0x4f5), region = 60 }
  0x35   : > { %1760 = dma.hbm_to_vmem [thread:$0]  (!%p2073_p12), %s2302_s5, 6144, %s306_s30, [#allocation6], %s1956_s12, %s1956_s12, %s1957_s18  }
  0x36   : > { %1927 = dma.done.wait (%p2303_p4), [#allocation3], 6144   ;;  %p2304_p13 = pmov %p2303_p4 }
  0x37   : > { %p2305_p7 = pmov %p2303_p4 }
  0x38   : > { %1929 = vsyncadd (%p2304_p13), [#allocation3], 4294961152 }
  0x39   : > { %1931 = dma.done.wait (%p2305_p7), [#allocation6], 6144   ;;  %p2306_p6 = pmov %p2303_p4 }
  0x3a   : > { %v425_v0 = vld [vmem:[#allocation2 + $0xf8] sm:$0xff]  ;;  %v424_v2 = vld [vmem:[#allocation2 + $0xf0] sm:$0xff]  ;;  %v423_v4 = vld [vmem:[#allocation2 + $0xe8] sm:$0xff]  ;;  %p383_p9 = scmp.lt.s32.totalorder %s2037_s17, 1  ;;  %s2307_s0 = sld [smem:[#allocation11_spill]]  ;;  %vm429_vm0 = vcmask 1046528  }
  0x3b   : > { %1933 = vsyncadd (%p2306_p6), [#allocation6], 4294961152  ;;  %v408_v1 = vld [vmem:[#allocation2 + $0x78] sm:$0xff]  ;;  %1509 = vmatprep.subr.mxu0 %v425_v0  ;;  %v407_v3 = vld [vmem:[#allocation2 + $0x70] sm:$0xff]  ;;  %vm604_vm1 = vcmask 1045504   ;;  %s2308_s2 = sld [smem:[#allocation13_spill]] }
  0x3c   : > { %1544 = vmatprep.subr.mxu1 %v408_v1  ;;  %1510 = vmatpush3.msra.mxu0 %v425_v0  ;;  %v406_v5 = vld [vmem:[#allocation2 + $0x68] sm:$0xff]  ;;  %v422_v6 = vld [vmem:[#allocation2 + $0xe0] sm:$0xff]  ;;  %v421_v8 = vld [vmem:[#allocation2 + $0xd8] sm:$0xff]  ;;  %s384_s25 = scalar_select %p383_p9, %s2037_s17, 1  ;;  %vm715_vm2 = vcmask 1040384  }
  0x3d   : > { %1545 = vmatpush3.msra.mxu1 %v408_v1  ;;  %1511 = vmatprep.subr.mxu0 %v424_v2  ;;  %v405_v7 = vld [vmem:[#allocation2 + $0x60] sm:$0xff]  ;;  %v404_v9 = vld [vmem:[#allocation2 + $0x58] sm:$0xff]  ;;  %v420_v10 = vld [vmem:[#allocation2 + $0xd0] sm:$0xff]  ;;  %s2309_s3 = sld [smem:[#allocation14_spill]] }
  0x3e   : > { %1546 = vmatprep.subr.mxu1 %v407_v3  ;;  %1512 = vmatpush3.msra.mxu0 %v424_v2  ;;  %v403_v11 = vld [vmem:[#allocation2 + $0x50] sm:$0xff]  ;;  %v419_v12 = vld [vmem:[#allocation2 + $0xc8] sm:$0xff]  ;;  %v418_v14 = vld [vmem:[#allocation2 + $0xc0] sm:$0xff]  ;;  %s1719_s27 = smul.u32 24, %s384_s25  ;;  %s2310_s4 = sld [smem:[#allocation15_spill]] }
  0x3f   : > { %1547 = vmatpush3.msra.mxu1 %v407_v3  ;;  %1513 = vmatprep.subr.mxu0 %v423_v4  ;;  %v402_v13 = vld [vmem:[#allocation2 + $0x48] sm:$0xff]  ;;  %v401_v15 = vld [vmem:[#allocation2 + $0x40] sm:$0xff]  ;;  %v417_v16 = vld [vmem:[#allocation2 + $0xb8] sm:$0xff] }
  0x40   : > { %1548 = vmatprep.subr.mxu1 %v406_v5  ;;  %1514 = vmatpush3.msra.mxu0 %v423_v4  ;;  %v400_v17 = vld [vmem:[#allocation2 + $0x38] sm:$0xff]  ;;  %v416_v18 = vld [vmem:[#allocation2 + $0xb0] sm:$0xff]  ;;  %v415_v20 = vld [vmem:[#allocation2 + $0xa8] sm:$0xff]  ;;  %s387_s12 = scalar_lea.vmem %s2307_s0, %s1719_s27 }
  0x41   : > { %1549 = vmatpush3.msra.mxu1 %v406_v5  ;;  %1515 = vmatprep.subr.mxu0 %v422_v6  ;;  %v399_v19 = vld [vmem:[#allocation2 + $0x30] sm:$0xff]  ;;  %v398_v21 = vld [vmem:[#allocation2 + $0x28] sm:$0xff]  ;;  %v414_v22 = vld [vmem:[#allocation2 + $0xa0] sm:$0xff] }
  0x42   : > { %1550 = vmatprep.subr.mxu1 %v405_v7  ;;  %1516 = vmatpush3.msra.mxu0 %v422_v6  ;;  %v397_v23 = vld [vmem:[#allocation2 + $0x20] sm:$0xff]  ;;  %v413_v24 = vld [vmem:[#allocation2 + $0x98] sm:$0xff]  ;;  %v2110_v27 = vld [vmem:[%s387_s12 + $0x8] sm:$0xff] }
  0x43   : > { %1551 = vmatpush3.msra.mxu1 %v405_v7  ;;  %1517 = vmatprep.subr.mxu0 %v421_v8  ;;  %v396_v25 = vld [vmem:[#allocation2 + $0x18] sm:$0xff]  ;;  %v388_v26 = vld [vmem:[%s387_s12] sm:$0xff]  ;;  %v412_v28 = vld [vmem:[#allocation2 + $0x90] sm:$0xff]  ;;  %v431_v32 = vrot.slane %v2110_v27, 1  ;;  %v606_v39 = vrot.slane %v2110_v27, 2 }
  0x44   : > { %1552 = vmatprep.subr.mxu1 %v404_v9  ;;  %1518 = vmatpush3.msra.mxu0 %v421_v8  ;;  %v395_v29 = vld [vmem:[#allocation2 + $0x10] sm:$0xff]  ;;  %v430_v31 = vrot.slane %v388_v26, 1  ;;  %v411_v33 = vld [vmem:[#allocation2 + $0x88] sm:$0xff]  ;;  %v410_v36 = vld [vmem:[#allocation2 + $0x80] sm:$0xff]  ;;  %v605_v38 = vrot.slane %v388_v26, 2 }
  0x45   : > { %1553 = vmatpush3.msra.mxu1 %v404_v9  ;;  %1519 = vmatprep.subr.mxu0 %v420_v10  ;;  %v2112_v30 = vld [vmem:[%s387_s12 + $0x10] sm:$0x3]  ;;  %v394_v34 = vld [vmem:[#allocation2 + $0x8] sm:$0xff]  ;;  %v393_v37 = vld [vmem:[#allocation2] sm:$0xff] }
  0x46   : > { %1554 = vmatprep.subr.mxu1 %v403_v11  ;;  %1520 = vmatpush3.msra.mxu0 %v420_v10  ;;  %v433_v35 = vrot.slane %v2112_v30, 1  ;;  %v432_v40 = vsel %vm429_vm0, %v430_v31, %v431_v32  ;;  %v603_v42 = vld [vmem:[#allocation2 + $0x178] sm:$0xff]  ;;  %v607_v43 = vsel %vm604_vm1, %v605_v38, %v606_v39  ;;  %v602_v44 = vld [vmem:[#allocation2 + $0x170] sm:$0xff]  ;;  %v601_v45 = vld [vmem:[#allocation2 + $0x168] sm:$0xff]  ;;  %v608_v58 = vrot.slane %v2112_v30, 2 }
  0x47   : > { %1555 = vmatpush3.msra.mxu1 %v403_v11  ;;  %1521 = vmatprep.subr.mxu0 %v419_v12  ;;  %v600_v46 = vld [vmem:[#allocation2 + $0x160] sm:$0xff]  ;;  %v599_v47 = vld [vmem:[#allocation2 + $0x158] sm:$0xff]  ;;  %v598_v48 = vld [vmem:[#allocation2 + $0x150] sm:$0xff] }
  0x48   : > { %1556 = vmatprep.subr.mxu1 %v402_v13  ;;  %1522 = vmatpush3.msra.mxu0 %v419_v12  ;;  %v434_v41 = vsel %vm429_vm0, %v431_v32, %v433_v35  ;;  %v597_v49 = vld [vmem:[#allocation2 + $0x148] sm:$0xff]  ;;  %v596_v50 = vld [vmem:[#allocation2 + $0x140] sm:$0xff]  ;;  %v595_v51 = vld [vmem:[#allocation2 + $0x138] sm:$0xff]  ;;  %v609_v60 = vsel %vm604_vm1, %v606_v39, %v608_v58 }
  0x49   : > { %1557 = vmatpush3.msra.mxu1 %v402_v13  ;;  %1523 = vmatprep.subr.mxu0 %v418_v14  ;;  %v594_v52 = vld [vmem:[#allocation2 + $0x130] sm:$0xff]  ;;  %v593_v53 = vld [vmem:[#allocation2 + $0x128] sm:$0xff]  ;;  %v592_v54 = vld [vmem:[#allocation2 + $0x120] sm:$0xff] }
  0x4a   : > { %1558 = vmatprep.subr.mxu1 %v401_v15  ;;  %1524 = vmatpush3.msra.mxu0 %v418_v14  ;;  %v591_v55 = vld [vmem:[#allocation2 + $0x118] sm:$0xff]  ;;  %v590_v56 = vld [vmem:[#allocation2 + $0x110] sm:$0xff]  ;;  %v589_v57 = vld [vmem:[#allocation2 + $0x108] sm:$0xff] }
  0x4b   : > { %1559 = vmatpush3.msra.mxu1 %v401_v15  ;;  %1525 = vmatprep.subr.mxu0 %v417_v16  ;;  %v588_v59 = vld [vmem:[#allocation2 + $0x100] sm:$0xff]  ;;  %vm1390_vm3 = vmneg %vm715_vm2 }
  0x4c   : > { %1560 = vmatprep.subr.mxu1 %v400_v17  ;;  %1526 = vmatpush3.msra.mxu0 %v417_v16  ;;  %v1387_v2 = vld [vmem:[%s2308_s2] ss:$0 sm:$0xff] }
  0x4d   : > { %1561 = vmatpush3.msra.mxu1 %v400_v17  ;;  %1527 = vmatprep.subr.mxu0 %v416_v18 }
  0x4e   : > { %1562 = vmatprep.subr.mxu1 %v399_v19  ;;  %1528 = vmatpush3.msra.mxu0 %v416_v18 }
  0x4f   : > { %1563 = vmatpush3.msra.mxu1 %v399_v19  ;;  %1529 = vmatprep.subr.mxu0 %v415_v20 }
  0x50   : > { %1564 = vmatprep.subr.mxu1 %v398_v21  ;;  %1530 = vmatpush3.msra.mxu0 %v415_v20 }
  0x51   : > { %1565 = vmatpush3.msra.mxu1 %v398_v21  ;;  %1531 = vmatprep.subr.mxu0 %v414_v22 }
  0x52   : > { %1566 = vmatprep.subr.mxu1 %v397_v23  ;;  %1532 = vmatpush3.msra.mxu0 %v414_v22 }
  0x53   : > { %1567 = vmatpush3.msra.mxu1 %v397_v23  ;;  %1533 = vmatprep.subr.mxu0 %v413_v24  ;;  %v2143_v23 = vld [vmem:[%s2288_s9] sm:$0x1] }
  0x54   : > { %1568 = vmatprep.subr.mxu1 %v396_v25  ;;  %1534 = vmatpush3.msra.mxu0 %v413_v24 }
  0x55   : > { %1569 = vmatpush3.msra.mxu1 %v396_v25  ;;  %1535 = vmatprep.subr.mxu0 %v412_v28 }
  0x56   : > { %1570 = vmatprep.subr.mxu1 %v395_v29  ;;  %1536 = vmatpush3.msra.mxu0 %v412_v28 }
  0x57   : > { %1571 = vmatpush3.msra.mxu1 %v395_v29  ;;  %1537 = vmatprep.subr.mxu0 %v411_v33 }
  0x58   : > { %1572 = vmatprep.subr.mxu1 %v394_v34  ;;  %1538 = vmatpush3.msra.mxu0 %v411_v33 }
  0x59   : > { %1573 = vmatpush3.msra.mxu1 %v394_v34  ;;  %1539 = vmatprep.subr.mxu0 %v410_v36 }
  0x5a   : > { %1574 = vmatprep.subr.mxu1 %v393_v37  ;;  %1540 = vmatpush3.msra.mxu0 %v410_v36 }
  0x5b   : > { %1541 = vmatprep.mubr.f32.mxu0 %v432_v40  ;;  %1575 = vmatpush3.msra.mxu1 %v393_v37 }
  0x5c   : > { %1576 = vmatprep.mubr.f32.mxu1 %v388_v26  ;;  %1542 = vmatmul.mubr.f32.vlgmr.msra.gmra.mxu0 %v434_v41 }
  0x5d   : > { %1577 = vmatmul.mubr.f32.vlgmr.msra.gmra.mxu1 %v2110_v27  ;;  %1579 = vmatprep.subr.mxu0 %v603_v42 }
  0x5e   : > { %1611 = vmatprep.mubr.f32.mxu0 %v607_v43  ;;  %1580 = vmatpush3.msra.mxu0 %v603_v42 }
  0x5f   : > { %1581 = vmatprep.subr.mxu0 %v602_v44 }
  0x60   : > { %1582 = vmatpush3.msra.mxu0 %v602_v44 }
  0x61   : > { %1583 = vmatprep.subr.mxu0 %v601_v45 }
  0x62   : > { %1584 = vmatpush3.msra.mxu0 %v601_v45 }
  0x63   : > { %1585 = vmatprep.subr.mxu0 %v600_v46 }
  0x64   : > { %1586 = vmatpush3.msra.mxu0 %v600_v46 }
  0x65   : > { %1587 = vmatprep.subr.mxu0 %v599_v47 }
  0x66   : > { %1588 = vmatpush3.msra.mxu0 %v599_v47 }
  0x67   : > { %1589 = vmatprep.subr.mxu0 %v598_v48 }
  0x68   : > { %1590 = vmatpush3.msra.mxu0 %v598_v48 }
  0x69   : > { %1591 = vmatprep.subr.mxu0 %v597_v49 }
  0x6a   : > { %1592 = vmatpush3.msra.mxu0 %v597_v49 }
  0x6b   : > { %1593 = vmatprep.subr.mxu0 %v596_v50 }
  0x6c   : > { %1594 = vmatpush3.msra.mxu0 %v596_v50 }
  0x6d   : > { %1595 = vmatprep.subr.mxu0 %v595_v51 }
  0x6e   : > { %1596 = vmatpush3.msra.mxu0 %v595_v51 }
  0x6f   : > { %1597 = vmatprep.subr.mxu0 %v594_v52 }
  0x70   : > { %1598 = vmatpush3.msra.mxu0 %v594_v52 }
  0x71   : > { %1599 = vmatprep.subr.mxu0 %v593_v53 }
  0x72   : > { %1600 = vmatpush3.msra.mxu0 %v593_v53 }
  0x73   : > { %1601 = vmatprep.subr.mxu0 %v592_v54 }
  0x74   : > { %1602 = vmatpush3.msra.mxu0 %v592_v54 }
  0x75   : > { %1603 = vmatprep.subr.mxu0 %v591_v55 }
  0x76   : > { %1604 = vmatpush3.msra.mxu0 %v591_v55 }
  0x77   : > { %1605 = vmatprep.subr.mxu0 %v590_v56 }
  0x78   : > { %1606 = vmatpush3.msra.mxu0 %v590_v56 }
  0x79   : > { %1607 = vmatprep.subr.mxu0 %v589_v57 }
  0x7a   : > { %1608 = vmatpush3.msra.mxu0 %v589_v57 }
  0x7b   : > { %1609 = vmatprep.subr.mxu0 %v588_v59 }
  0x7c   : > { %1610 = vmatpush3.msra.mxu0 %v588_v59 }
  0x7d   : > { %1612 = vmatmul.mubr.f32.vlgmr.msra.gmra.mxu0 %v609_v60 }
 0x11c   : > { %v1543_v61 = vpop.f32.mrf.mxu0 }
 0x11d   : > { %v1578_v62 = vpop.f32.mrf.mxu1 }
 0x11e   : > { %v503_v63 = vpop.f32.mrf.mxu0  ;;  %v584_v1 = vadd.f32 %v1578_v62, %v1543_v61  ;;  %v858_v61 = vld [vmem:[#allocation5 + $0x78] sm:$0xff]  ;;  %v857_v62 = vld [vmem:[#allocation5 + $0x70] sm:$0xff] }
 0x11f   : > { %v578_v0 = vpop.f32.mrf.mxu1  ;;  %1649 = vmatprep.subr.mxu0 %v858_v61 }
 0x120   : > { %v579_v4 = vadd.f32 %v578_v0, %v503_v63  ;;  %v875_v63 = vld [vmem:[#allocation5 + $0xf8] sm:$0xff]  ;;  %v874_v0 = vld [vmem:[#allocation5 + $0xf0] sm:$0xff]  ;;  %1650 = vmatpush3.msra.mxu0 %v858_v61 }
 0x121   : > { %1614 = vmatprep.subr.mxu1 %v875_v63  ;;  %1651 = vmatprep.subr.mxu0 %v857_v62 }
 0x122   : > { %1615 = vmatpush3.msra.mxu1 %v875_v63  ;;  %1652 = vmatpush3.msra.mxu0 %v857_v62 }
 0x123   : > { %1616 = vmatprep.subr.mxu1 %v874_v0 }
 0x124   : > { %1617 = vmatpush3.msra.mxu1 %v874_v0 }
 0x13d   : > { %v1613_v3 = vpop.f32.mrf.mxu0 }
 0x13e   : > { %v688_v5 = vadd.f32 %v1613_v3, %v584_v1  ;;  %v856_v1 = vld [vmem:[#allocation5 + $0x68] sm:$0xff]  ;;  %v855_v3 = vld [vmem:[#allocation5 + $0x60] sm:$0xff] }
 0x13f   : > { %v678_v6 = vpop.f32.mrf.mxu0  ;;  %1653 = vmatprep.subr.mxu0 %v856_v1 }
 0x140   : > { %v2130_v7 = vadd.f32 %v1387_v2, %v688_v5  ;;  %v687_v8 = vadd.f32 %v678_v6, %v579_v4  ;;  %v872_v4 = vld [vmem:[#allocation5 + $0xe0] sm:$0xff]  ;;  %1654 = vmatpush3.msra.mxu0 %v856_v1  ;;  %v854_v5 = vld [vmem:[#allocation5 + $0x58] sm:$0xff] }
 0x141   : > { %v871_v6 = vld [vmem:[#allocation5 + $0xd8] sm:$0xff]  ;;  %1655 = vmatprep.subr.mxu0 %v855_v3 }
 0x142   : > { %v2132_v9 = vadd.f32 %v1387_v2, %v687_v8  ;;  %v707_v10 = vmul.f32 %v2130_v7, %v2130_v7  ;;  %v873_v2 = vld [vmem:[#allocation5 + $0xe8] sm:$0xff]  ;;  %1656 = vmatpush3.msra.mxu0 %v855_v3  ;;  %v853_v8 = vld [vmem:[#allocation5 + $0x50] sm:$0xff] }
 0x143   : > { %1618 = vmatprep.subr.mxu1 %v873_v2  ;;  %1657 = vmatprep.subr.mxu0 %v854_v5 }
 0x144   : > { %v699_v11 = vadd.f32 %v2130_v7, %v2132_v9  ;;  %v706_v12 = vmul.f32 %v2132_v9, %v2132_v9  ;;  %1619 = vmatpush3.msra.mxu1 %v873_v2  ;;  %1658 = vmatpush3.msra.mxu0 %v854_v5 }
 0x145   : > { %1620 = vmatprep.subr.mxu1 %v872_v4  ;;  %1659 = vmatprep.subr.mxu0 %v853_v8 }
 0x146   : > { %v700_v13 = vrot.slane %v699_v11, 4  ;;  %v708_v14 = vadd.f32 %v707_v10, %v706_v12  ;;  %1621 = vmatpush3.msra.mxu1 %v872_v4  ;;  %v870_v10 = vld [vmem:[#allocation5 + $0xd0] sm:$0xff]  ;;  %v869_v12 = vld [vmem:[#allocation5 + $0xc8] sm:$0xff]  ;;  %1660 = vmatpush3.msra.mxu0 %v853_v8 }
 0x147   : > { %1622 = vmatprep.subr.mxu1 %v871_v6 }
 0x148   : > { %v701_v15 = vadd.f32 %v700_v13, %v699_v11  ;;  %v709_v16 = vrot.slane %v708_v14, 4  ;;  %1623 = vmatpush3.msra.mxu1 %v871_v6  ;;  %v852_v11 = vld [vmem:[#allocation5 + $0x48] sm:$0xff]  ;;  %v851_v13 = vld [vmem:[#allocation5 + $0x40] sm:$0xff] }
 0x149   : > { %1624 = vmatprep.subr.mxu1 %v870_v10  ;;  %1661 = vmatprep.subr.mxu0 %v852_v11 }
 0x14a   : > { %v702_v17 = vrot.slane %v701_v15, 2  ;;  %v710_v18 = vadd.f32 %v709_v16, %v708_v14  ;;  %1625 = vmatpush3.msra.mxu1 %v870_v10  ;;  %v868_v14 = vld [vmem:[#allocation5 + $0xc0] sm:$0xff]  ;;  %1662 = vmatpush3.msra.mxu0 %v852_v11  ;;  %v867_v16 = vld [vmem:[#allocation5 + $0xb8] sm:$0xff] }
 0x14b   : > { %1626 = vmatprep.subr.mxu1 %v869_v12  ;;  %1663 = vmatprep.subr.mxu0 %v851_v13 }
 0x14c   : > { %v703_v19 = vadd.f32 %v702_v17, %v701_v15  ;;  %v711_v20 = vrot.slane %v710_v18, 2  ;;  %1627 = vmatpush3.msra.mxu1 %v869_v12  ;;  %v850_v15 = vld [vmem:[#allocation5 + $0x38] sm:$0xff]  ;;  %1664 = vmatpush3.msra.mxu0 %v851_v13  ;;  %v849_v17 = vld [vmem:[#allocation5 + $0x30] sm:$0xff] }
 0x14d   : > { %1628 = vmatprep.subr.mxu1 %v868_v14  ;;  %1665 = vmatprep.subr.mxu0 %v850_v15 }
 0x14e   : > { %v704_v21 = vrot.slane %v703_v19, 1  ;;  %v712_v22 = vadd.f32 %v711_v20, %v710_v18  ;;  %1629 = vmatpush3.msra.mxu1 %v868_v14  ;;  %v866_v18 = vld [vmem:[#allocation5 + $0xb0] sm:$0xff]  ;;  %1666 = vmatpush3.msra.mxu0 %v850_v15  ;;  %v865_v20 = vld [vmem:[#allocation5 + $0xa8] sm:$0xff] }
 0x14f   : > { %1630 = vmatprep.subr.mxu1 %v867_v16  ;;  %1667 = vmatprep.subr.mxu0 %v849_v17 }
 0x150   : > { %v705_v24 = vadd.f32 %v704_v21, %v703_v19  ;;  %v713_v25 = vrot.slane %v712_v22, 1  ;;  %1631 = vmatpush3.msra.mxu1 %v867_v16  ;;  %v848_v19 = vld [vmem:[#allocation5 + $0x28] sm:$0xff]  ;;  %1668 = vmatpush3.msra.mxu0 %v849_v17  ;;  %v847_v21 = vld [vmem:[#allocation5 + $0x20] sm:$0xff] }
 0x151   : > { %1632 = vmatprep.subr.mxu1 %v866_v18  ;;  %1669 = vmatprep.subr.mxu0 %v848_v19 }
 0x152   : > { %v716_v26 = vsel %vm715_vm2, %v705_v24, 0.0  ;;  %v736_v27 = vmul.f32 %v705_v24, %v2143_v23  ;;  %v714_v28 = vadd.f32 %v713_v25, %v712_v22  ;;  %1633 = vmatpush3.msra.mxu1 %v866_v18  ;;  %v864_v22 = vld [vmem:[#allocation5 + $0xa0] sm:$0xff]  ;;  %1670 = vmatpush3.msra.mxu0 %v848_v19  ;;  %v846_v24 = vld [vmem:[#allocation5 + $0x18] sm:$0xff] }
 0x153   : > { %717 = vadd.xlane.f32.xlu0 %v716_v26  ;;  %1634 = vmatprep.subr.mxu1 %v865_v20  ;;  %v863_v25 = vld [vmem:[#allocation5 + $0x98] sm:$0xff]  ;;  %v845_v26 = vld [vmem:[#allocation5 + $0x10] sm:$0xff] }
 0x154   : > { %v737_v29 = vsel %vm715_vm2, %v736_v27, 0.0  ;;  %v747_v30 = vmul.f32 %v714_v28, %v2143_v23  ;;  %v726_v31 = vsel %vm715_vm2, %v714_v28, 0.0  ;;  %1635 = vmatpush3.msra.mxu1 %v865_v20  ;;  %1671 = vmatprep.subr.mxu0 %v847_v21  ;;  %v862_v27 = vld [vmem:[#allocation5 + $0x90] sm:$0xff]  ;;  %v844_v28 = vld [vmem:[#allocation5 + $0x8] sm:$0xff] }
 0x155   : > { %738 = vadd.xlane.f32.xlu1 %v737_v29  ;;  %1636 = vmatprep.subr.mxu1 %v864_v22  ;;  %v861_v29 = vld [vmem:[#allocation5 + $0x88] sm:$0xff]  ;;  %v1050_v20 = vld [vmem:[#allocation5 + $0x170] sm:$0xff] }
 0x156   : > { %v748_v32 = vsel %vm715_vm2, %v747_v30, 0.0  ;;  %1672 = vmatpush3.msra.mxu0 %v847_v21  ;;  %1637 = vmatpush3.msra.mxu1 %v864_v22  ;;  %v843_v30 = vld [vmem:[#allocation5] sm:$0xff]  ;;  %v1049_v22 = vld [vmem:[#allocation5 + $0x168] sm:$0xff] }
 0x157   : > { %727 = vadd.xlane.f32.xlu0 %v726_v31  ;;  %1673 = vmatprep.subr.mxu0 %v846_v24  ;;  %v860_v31 = vld [vmem:[#allocation5 + $0x80] sm:$0xff] }
 0x158   : > { %1638 = vmatprep.subr.mxu1 %v863_v25  ;;  %1674 = vmatpush3.msra.mxu0 %v846_v24  ;;  %v1048_v24 = vld [vmem:[#allocation5 + $0x160] sm:$0xff] }
 0x159   : > { %749 = vadd.xlane.f32.xlu1 %v748_v32  ;;  %1639 = vmatpush3.msra.mxu1 %v863_v25  ;;  %v2159_v32 = vld [vmem:[#allocation5 + $0x178] sm:$0xff] }
 0x15a   : > { %1675 = vmatprep.subr.mxu0 %v845_v26  ;;  %1640 = vmatprep.subr.mxu1 %v862_v27  ;;  %v1047_v25 = vld [vmem:[#allocation5 + $0x158] sm:$0xff] }
 0x15b   : > { %1676 = vmatpush3.msra.mxu0 %v845_v26  ;;  %1641 = vmatpush3.msra.mxu1 %v862_v27  ;;  %v1046_v26 = vld [vmem:[#allocation5 + $0x150] sm:$0xff]  ;;  %v1045_v27 = vld [vmem:[#allocation5 + $0x148] sm:$0xff] }
 0x15c   : > { %1677 = vmatprep.subr.mxu0 %v844_v28  ;;  %1642 = vmatprep.subr.mxu1 %v861_v29 }
 0x15d   : > { %1678 = vmatpush3.msra.mxu0 %v844_v28  ;;  %1643 = vmatpush3.msra.mxu1 %v861_v29  ;;  %v1044_v28 = vld [vmem:[#allocation5 + $0x140] sm:$0xff]  ;;  %v1043_v29 = vld [vmem:[#allocation5 + $0x138] sm:$0xff] }
 0x15e   : > { %1679 = vmatprep.subr.mxu0 %v843_v30  ;;  %1644 = vmatprep.subr.mxu1 %v860_v31 }
 0x15f   : > { %1680 = vmatpush3.msra.mxu0 %v843_v30  ;;  %1645 = vmatpush3.msra.mxu1 %v860_v31  ;;  %v1042_v30 = vld [vmem:[#allocation5 + $0x130] sm:$0xff]  ;;  %v1041_v31 = vld [vmem:[#allocation5 + $0x128] sm:$0xff] }
 0x160   : > { %1684 = vmatprep.subr.mxu1 %v2159_v32 }
 0x1dc   : > { %v718_v33 = vpop.xlane.xlu0 %717 }
 0x1dd   : > { %v719_v34 = vrot.slane %v718_v33, 4 }
 0x1de   : > { %v739_v35 = vpop.xlane.xlu1 %738 }
 0x1df   : > { %v720_v36 = vadd.f32 %v719_v34, %v718_v33  ;;  %v740_v37 = vrot.slane %v739_v35, 4 }
 0x1e0   : > { %v728_v38 = vpop.xlane.xlu0 %727 }
 0x1e1   : > { %v721_v39 = vrot.slane %v720_v36, 2  ;;  %v741_v40 = vadd.f32 %v740_v37, %v739_v35  ;;  %v729_v41 = vrot.slane %v728_v38, 4  ;;  %v803_v37 = vlaneseq }
 0x1e2   : > { %v750_v42 = vpop.xlane.xlu1 %749 }
 0x1e3   : > { %v742_v43 = vrot.slane %v741_v40, 2  ;;  %v730_v44 = vadd.f32 %v729_v41, %v728_v38  ;;  %v751_v45 = vrot.slane %v750_v42, 4  ;;  %v722_v46 = vadd.f32 %v721_v39, %v720_v36 }
 0x1e4   : > { %v2164_v38 = vsub.f32 1.0, %v2143_v23 }
 0x1e5   : > { %v731_v47 = vrot.slane %v730_v44, 2  ;;  %v752_v48 = vadd.f32 %v751_v45, %v750_v42  ;;  %v723_v49 = vrot.slane %v722_v46, 1  ;;  %v743_v50 = vadd.f32 %v742_v43, %v741_v40  ;;  %v697_v45 = vld [vmem:[%s2309_s3] sm:$0x1] }
 0x1e6   : > { %v804_v40 = vshrl.u32 %v803_v37, 7 }
 0x1e7   : > { %v753_v51 = vrot.slane %v752_v48, 2  ;;  %v724_v52 = vadd.f32 %v723_v49, %v722_v46  ;;  %v732_v53 = vadd.f32 %v731_v47, %v730_v44  ;;  %v744_v54 = vrot.slane %v743_v50, 1 }
 0x1e9   : > { %1720 = vpush %v724_v52  ;;  %v733_v55 = vrot.slane %v732_v53, 1  ;;  %v754_v56 = vadd.f32 %v753_v51, %v752_v48  ;;  %v745_v59 = vadd.f32 %v744_v54, %v743_v50  ;;  %v2174_v50 = vsub.s32 0, %v804_v40 }
 0x1eb   : > { %v734_v57 = vadd.f32 %v733_v55, %v732_v53  ;;  %v755_v58 = vrot.slane %v754_v56, 1  ;;  %v698_v53 = vld [vmem:[%s2310_s4] sm:$0x1] }
 0x1ed   : > { %1722 = vpush %v734_v57  ;;  %v756_v60 = vadd.f32 %v755_v58, %v754_v56 }
 0x1ee   : > { %1724 = vpush %v745_v59 }
 0x1ef   : > { %1726 = vpush %v756_v60 }
 0x21a   : > { %s1721_s29 = spop %1720 }
 0x21e   : > { %s1723_s11 = spop %1722 }
 0x21f   : > { %s1725_s25 = spop %1724 }
 0x220   : > { %s758_s27 = ssub.f32 %s1721_s29, %s1725_s25  ;;  %s2151_s28 = smul.f32 0.0009765625, %s1725_s25 }
 0x221   : > { %s1727_s30 = spop %1726 }
 0x222   : > { %s2153_s12 = smul.f32 0.0009765625, %s758_s27  ;;  %s759_s18 = ssub.f32 %s1723_s11, %s1727_s30 }
 0x223   : > { %s769_s20 = smul.f32 %s2151_s28, %s2151_s28  ;;  %s791_s11 = ssub.f32 0.0, %s2151_s28 }
 0x224   : > { %s774_s21 = smul.f32 %s2153_s12, %s2153_s12 }
 0x225   : > { %s768_s26 = smul.f32 0.0009765625, %s1727_s30 }
 0x226   : > { %s773_s29 = smul.f32 0.0009765625, %s759_s18  ;;  %s795_s18 = ssub.f32 0.0, %s2153_s12 }
 0x227   : > { %s770_s25 = ssub.f32 %s768_s26, %s769_s20 }
 0x228   : > { %s775_s27 = ssub.f32 %s773_s29, %s774_s21 }
 0x229   : > { %s776_s0 = sadd.f32 1e-05, %s770_s25 }
 0x22a   : > { %s780_s1 = sadd.f32 1e-05, %s775_s27 }
 0x22b   : > { %v777_v33 = vstv %s776_s0 }
 0x22c   : > { %1808 = vrsqrt.f32 %v777_v33  ;;  %v781_v34 = vstv %s780_s1  ;;  %v1039_v33 = vld [vmem:[#allocation5 + $0x118] sm:$0xff] }
 0x22d   : > { %1810 = vrsqrt.f32 %v781_v34  ;;  %v1038_v34 = vld [vmem:[#allocation5 + $0x110] sm:$0xff] }
 0x239   : > { %v1809_v35 = vpop.eup %1808 }
 0x23a   : > { %v1811_v36 = vpop.eup %1810  ;;  %1728 = vpush %v1809_v35  ;;  %v1037_v35 = vld [vmem:[#allocation5 + $0x108] sm:$0xff] }
 0x23b   : > { %1730 = vpush %v1811_v36  ;;  %v1036_v36 = vld [vmem:[#allocation5 + $0x100] sm:$0xff] }
 0x26b   : > { %s1729_s30 = spop %1728 }
 0x26c   : > { %v785_v39 = vstv %s1729_s30  ;;  %s792_s20 = smul.f32 %s1729_s30, %s791_s11  ;;  %s1731_s21 = spop %1730 }
 0x26d   : > { %v787_v41 = vstv %s1731_s21  ;;  %s796_s0 = smul.f32 %s1731_s21, %s795_s18  ;;  %v786_v42 = vmul.f32 %v785_v39, %v2143_v23 }
 0x26e   : > { %v793_v43 = vstv %s792_s20  ;;  %v788_v44 = vmul.f32 %v787_v41, %v2164_v38 }
 0x26f   : > { %v797_v46 = vstv %s796_s0  ;;  %v794_v47 = vmul.f32 %v793_v43, %v2143_v23 }
 0x270   : > { %v789_v48 = vadd.f32 %v788_v44, %v786_v42  ;;  %v798_v49 = vmul.f32 %v797_v46, %v2164_v38 }
 0x272   : > { %v790_v51 = vmul.f32 %v789_v48, %v697_v45  ;;  %v799_v52 = vadd.f32 %v798_v49, %v794_v47 }
 0x274   : > { %v800_v54 = vmul.f32 %v799_v52, %v697_v45  ;;  %v806_v55 = vrot.slane %v790_v51, %v2174_v50  ;;  %v1392_v45 = vld [vmem:[%s2285_s6] ss:$0 sm:$0xff] }
 0x276   : > { %v801_v56 = vadd.f32 %v800_v54, %v698_v53  ;;  %v808_v57 = vmul.f32 %v806_v55, %v2132_v9  ;;  %v809_v58 = vmul.f32 %v806_v55, %v2130_v7 }
 0x278   : > { %v814_v59 = vrot.slane %v801_v56, %v2174_v50 }
 0x27a   : > { %v816_v60 = vadd.f32 %v814_v59, %v808_v57  ;;  %v817_v61 = vadd.f32 %v814_v59, %v809_v58 }
 0x27c   : > { %v1388_v62 = vmul.f32 -1.442695, %v816_v60  ;;  %v1389_v63 = vmul.f32 -1.442695, %v817_v61 }
 0x27e   : > { %1812 = vpow2.f32 %v1388_v62 }
 0x27f   : > { %1814 = vpow2.f32 %v1389_v63 }
 0x28b   : > { %v1813_v0 = vpop.eup %1812 }
 0x28c   : > { %v1815_v1 = vpop.eup %1814  ;;  %v824_v2 = vadd.f32 1.0, %v1813_v0 }
 0x28d   : > { %v825_v3 = vadd.f32 1.0, %v1815_v1 }
 0x28e   : > { %1816 = vrcp.f32 %v824_v2 }
 0x28f   : > { %1818 = vrcp.f32 %v825_v3 }
 0x29b   : > { %v1817_v4 = vpop.eup %1816 }
 0x29c   : > { %v1819_v5 = vpop.eup %1818  ;;  %v830_v6 = vmul.f32 %v1817_v4, %v816_v60 }
 0x29d   : > { %v831_v7 = vmul.f32 %v1819_v5, %v817_v61 }
 0x29e   : > { %v834_v9 = vrot.slane %v830_v6, 7 }
 0x29f   : > { %v835_v8 = vrot.slane %v831_v7, 7 }
 0x2a0   : > { %1681 = vmatprep.mubr.msk.f32.mxu0 %vm1390_vm3, %v834_v9  ;;  %v840_v10 = vsel %vm715_vm2, 0.0, %v834_v9 }
 0x2a1   : > { %v2186_v11 = vsel %vm715_vm2, %v834_v9, %v835_v8  ;;  %v878_v12 = vrot.slane %v840_v10, 1  ;;  %v841_v13 = vsel %vm715_vm2, %v835_v8, 0.0  ;;  %v1052_v17 = vrot.slane %v840_v10, 2 }
 0x2a2   : > { %v879_v14 = vrot.slane %v2186_v11, 1  ;;  %1682 = vmatmul.mubr.f32.vlgmr.msra.gmra.mxu0 %v2186_v11  ;;  %v1053_v15 = vrot.slane %v2186_v11, 2  ;;  %v881_v16 = vrot.slane %v841_v13, 1  ;;  %v1055_v37 = vrot.slane %v841_v13, 2 }
 0x2a4   : > { %v880_v18 = vsel %vm429_vm0, %v878_v12, %v879_v14  ;;  %v882_v19 = vsel %vm429_vm0, %v879_v14, %v881_v16  ;;  %v1054_v21 = vsel %vm604_vm1, %v1052_v17, %v1053_v15  ;;  %v1056_v39 = vsel %vm604_vm1, %v1053_v15, %v1055_v37 }
 0x2a5   : > { %1646 = vmatprep.mubr.f32.mxu1 %v880_v18 }
 0x2a6   : > { %1647 = vmatmul.mubr.f32.vlgmr.msra.gmra.mxu1 %v882_v19 }
 0x2a7   : > { %1685 = vmatpush3.msra.mxu1 %v2159_v32  ;;  %1716 = vmatprep.mubr.f32.mxu1 %v1054_v21  ;;  %v1040_v32 = vld [vmem:[#allocation5 + $0x120] sm:$0xff] }
 0x2a8   : > { %1686 = vmatprep.subr.mxu1 %v1050_v20 }
 0x2a9   : > { %1687 = vmatpush3.msra.mxu1 %v1050_v20 }
 0x2aa   : > { %1688 = vmatprep.subr.mxu1 %v1049_v22 }
 0x2ab   : > { %1689 = vmatpush3.msra.mxu1 %v1049_v22 }
 0x2ac   : > { %1690 = vmatprep.subr.mxu1 %v1048_v24 }
 0x2ad   : > { %1691 = vmatpush3.msra.mxu1 %v1048_v24 }
 0x2ae   : > { %1692 = vmatprep.subr.mxu1 %v1047_v25 }
 0x2af   : > { %1693 = vmatpush3.msra.mxu1 %v1047_v25 }
 0x2b0   : > { %1694 = vmatprep.subr.mxu1 %v1046_v26 }
 0x2b1   : > { %1695 = vmatpush3.msra.mxu1 %v1046_v26 }
 0x2b2   : > { %1696 = vmatprep.subr.mxu1 %v1045_v27 }
 0x2b3   : > { %1697 = vmatpush3.msra.mxu1 %v1045_v27 }
 0x2b4   : > { %1698 = vmatprep.subr.mxu1 %v1044_v28 }
 0x2b5   : > { %1699 = vmatpush3.msra.mxu1 %v1044_v28 }
 0x2b6   : > { %1700 = vmatprep.subr.mxu1 %v1043_v29 }
 0x2b7   : > { %1701 = vmatpush3.msra.mxu1 %v1043_v29 }
 0x2b8   : > { %1702 = vmatprep.subr.mxu1 %v1042_v30 }
 0x2b9   : > { %1703 = vmatpush3.msra.mxu1 %v1042_v30 }
 0x2ba   : > { %1704 = vmatprep.subr.mxu1 %v1041_v31 }
 0x2bb   : > { %1705 = vmatpush3.msra.mxu1 %v1041_v31 }
 0x2bc   : > { %1706 = vmatprep.subr.mxu1 %v1040_v32 }
 0x2bd   : > { %1707 = vmatpush3.msra.mxu1 %v1040_v32 }
 0x2be   : > { %1708 = vmatprep.subr.mxu1 %v1039_v33 }
 0x2bf   : > { %1709 = vmatpush3.msra.mxu1 %v1039_v33 }
 0x2c0   : > { %1710 = vmatprep.subr.mxu1 %v1038_v34 }
 0x2c1   : > { %1711 = vmatpush3.msra.mxu1 %v1038_v34 }
 0x2c2   : > { %1712 = vmatprep.subr.mxu1 %v1037_v35 }
 0x2c3   : > { %1713 = vmatpush3.msra.mxu1 %v1037_v35 }
 0x2c4   : > { %1714 = vmatprep.subr.mxu1 %v1036_v36 }
 0x2c5   : > { %1715 = vmatpush3.msra.mxu1 %v1036_v36 }
 0x2c6   : > { %1717 = vmatmul.mubr.f32.vlgmr.msra.gmra.mxu1 %v1056_v39 }
 0x362   : > { %v1683_v41 = vpop.f32.mrf.mxu0 }
 0x364   : > { %v1026_v44 = vpop.f32.mrf.mxu0 }
 0x366   : > { %v1648_v40 = vpop.f32.mrf.mxu1 }
 0x367   : > { %v1032_v43 = vadd.f32 %v1683_v41, %v1648_v40 }
 0x368   : > { %v951_v42 = vpop.f32.mrf.mxu1 }
 0x369   : > { %v1027_v47 = vadd.f32 %v1026_v44, %v951_v42 }
 0x386   : > { %v1718_v46 = vpop.f32.mrf.mxu1 }
 0x387   : > { %v1135_v48 = vadd.f32 %v1718_v46, %v1032_v43 }
 0x388   : > { %v1125_v49 = vpop.f32.mrf.mxu1 }
 0x389   : > { %v2200_v51 = vadd.f32 %v1392_v45, %v1135_v48  ;;  %v1134_v52 = vadd.f32 %v1125_v49, %v1027_v47 }
 0x38b   : > { %v2202_v53 = vadd.f32 %v1392_v45, %v1134_v52  ;;  %v1154_v54 = vmul.f32 %v2200_v51, %v2200_v51 }
 0x38d   : > { %v1146_v55 = vadd.f32 %v2200_v51, %v2202_v53  ;;  %v1153_v56 = vmul.f32 %v2202_v53, %v2202_v53 }
 0x38f   : > { %v1147_v57 = vrot.slane %v1146_v55, 4  ;;  %v1155_v58 = vadd.f32 %v1154_v54, %v1153_v56  ;;  %v1144_v54 = vld [vmem:[%s2286_s7] sm:$0x1] }
 0x391   : > { %v1148_v59 = vadd.f32 %v1147_v57, %v1146_v55  ;;  %v1156_v60 = vrot.slane %v1155_v58, 4 }
 0x393   : > { %v1149_v61 = vrot.slane %v1148_v59, 2  ;;  %v1157_v62 = vadd.f32 %v1156_v60, %v1155_v58 }
 0x395   : > { %v1150_v63 = vadd.f32 %v1149_v61, %v1148_v59  ;;  %v1158_v0 = vrot.slane %v1157_v62, 2  ;;  %v1145_v61 = vld [vmem:[%s2287_s8] sm:$0x1] }
 0x397   : > { %v1151_v1 = vrot.slane %v1150_v63, 1  ;;  %v1159_v2 = vadd.f32 %v1158_v0, %v1157_v62 }
 0x399   : > { %v1152_v3 = vadd.f32 %v1151_v1, %v1150_v63  ;;  %v1160_v4 = vrot.slane %v1159_v2, 1 }
 0x39b   : > { %v1162_v5 = vsel %vm715_vm2, %v1152_v3, 0.0  ;;  %v1161_v6 = vadd.f32 %v1160_v4, %v1159_v2  ;;  %v1182_v7 = vmul.f32 %v1152_v3, %v2143_v23 }
 0x39c   : > { %1163 = vadd.xlane.f32.xlu0 %v1162_v5 }
 0x39d   : > { %v1172_v9 = vsel %vm715_vm2, %v1161_v6, 0.0  ;;  %v1193_v8 = vmul.f32 %v1161_v6, %v2143_v23  ;;  %v1183_v10 = vsel %vm715_vm2, %v1182_v7, 0.0 }
 0x39e   : > { %1173 = vadd.xlane.f32.xlu1 %v1172_v9 }
 0x39f   : > { %v1194_v11 = vsel %vm715_vm2, %v1193_v8, 0.0 }
 0x3a0   : > { %1184 = vadd.xlane.f32.xlu0 %v1183_v10 }
 0x3a2   : > { %1195 = vadd.xlane.f32.xlu1 %v1194_v11 }
 0x425   : > { %v1164_v12 = vpop.xlane.xlu0 %1163 }
 0x426   : > { %v1165_v13 = vrot.slane %v1164_v12, 4 }
 0x427   : > { %v1174_v14 = vpop.xlane.xlu1 %1173 }
 0x428   : > { %v1166_v15 = vadd.f32 %v1165_v13, %v1164_v12  ;;  %v1175_v16 = vrot.slane %v1174_v14, 4 }
 0x429   : > { %v1185_v17 = vpop.xlane.xlu0 %1184 }
 0x42a   : > { %v1167_v18 = vrot.slane %v1166_v15, 2  ;;  %v1176_v19 = vadd.f32 %v1175_v16, %v1174_v14  ;;  %v1186_v20 = vrot.slane %v1185_v17, 4 }
 0x42b   : > { %v1196_v21 = vpop.xlane.xlu1 %1195 }
 0x42c   : > { %v1177_v22 = vrot.slane %v1176_v19, 2  ;;  %v1187_v24 = vadd.f32 %v1186_v20, %v1185_v17  ;;  %v1197_v25 = vrot.slane %v1196_v21, 4  ;;  %v1168_v26 = vadd.f32 %v1167_v18, %v1166_v15 }
 0x42e   : > { %v1188_v27 = vrot.slane %v1187_v24, 2  ;;  %v1198_v28 = vadd.f32 %v1197_v25, %v1196_v21  ;;  %v1169_v29 = vrot.slane %v1168_v26, 1  ;;  %v1178_v30 = vadd.f32 %v1177_v22, %v1176_v19 }
 0x430   : > { %v1189_v31 = vadd.f32 %v1188_v27, %v1187_v24  ;;  %v1199_v32 = vrot.slane %v1198_v28, 2  ;;  %v1170_v33 = vadd.f32 %v1169_v29, %v1168_v26  ;;  %v1179_v34 = vrot.slane %v1178_v30, 1 }
 0x432   : > { %v1200_v35 = vadd.f32 %v1199_v32, %v1198_v28  ;;  %1732 = vpush %v1170_v33  ;;  %v1180_v36 = vadd.f32 %v1179_v34, %v1178_v30  ;;  %v1190_v37 = vrot.slane %v1189_v31, 1 }
 0x434   : > { %1734 = vpush %v1180_v36  ;;  %v1191_v39 = vadd.f32 %v1190_v37, %v1189_v31  ;;  %v1201_v40 = vrot.slane %v1200_v35, 1 }
 0x436   : > { %1736 = vpush %v1191_v39  ;;  %v1202_v41 = vadd.f32 %v1201_v40, %v1200_v35 }
 0x438   : > { %1738 = vpush %v1202_v41 }
 0x463   : > { %s1733_s27 = spop %1732 }
 0x465   : > { %s1735_s11 = spop %1734 }
 0x467   : > { %s1737_s30 = spop %1736 }
 0x468   : > { %s1204_s18 = ssub.f32 %s1733_s27, %s1737_s30  ;;  %s1208_s20 = smul.f32 0.0009765625, %s1737_s30 }
 0x469   : > { %s1739_s21 = spop %1738 }
 0x46a   : > { %s1211_s0 = smul.f32 0.0009765625, %s1204_s18  ;;  %s1205_s1 = ssub.f32 %s1735_s11, %s1739_s21 }
 0x46b   : > { %s1215_s26 = smul.f32 %s1208_s20, %s1208_s20  ;;  %s1236_s27 = ssub.f32 0.0, %s1208_s20 }
 0x46c   : > { %s1220_s28 = smul.f32 %s1211_s0, %s1211_s0  ;;  %s1240_s18 = ssub.f32 0.0, %s1211_s0 }
 0x46d   : > { %s1214_s12 = smul.f32 0.0009765625, %s1739_s21 }
 0x46e   : > { %s1219_s29 = smul.f32 0.0009765625, %s1205_s1  ;;  %s1400_s1 = sshll.u32 %s2037_s17, 8 }
 0x46f   : > { %s1216_s25 = ssub.f32 %s1214_s12, %s1215_s26 }
 0x470   : > { %s1221_s2 = ssub.f32 %s1219_s29, %s1220_s28 }
 0x471   : > { %s1222_s3 = sadd.f32 1e-05, %s1216_s25  ;;  %s2235_s25 = scalar_lea.hbm %s2289_s10, %s1400_s1 }
 0x472   : > { %s1226_s4 = sadd.f32 1e-05, %s1221_s2 }
 0x473   : > { %v1223_v42 = vstv %s1222_s3 }
 0x474   : > { %1820 = vrsqrt.f32 %v1223_v42  ;;  %v1227_v43 = vstv %s1226_s4 }
 0x475   : > { %1822 = vrsqrt.f32 %v1227_v43 }
 0x481   : > { %v1821_v44 = vpop.eup %1820 }
 0x482   : > { %v1823_v45 = vpop.eup %1822  ;;  %1740 = vpush %v1821_v44 }
 0x483   : > { %1742 = vpush %v1823_v45 }
 0x4b3   : > { %s1741_s30 = spop %1740 }
 0x4b4   : > { %v1230_v46 = vstv %s1741_s30  ;;  %s1237_s11 = smul.f32 %s1741_s30, %s1236_s27  ;;  %s1743_s5 = spop %1742 }
 0x4b5   : > { %v1232_v47 = vstv %s1743_s5  ;;  %s1241_s21 = smul.f32 %s1743_s5, %s1240_s18  ;;  %v1231_v48 = vmul.f32 %v1230_v46, %v2143_v23  ;;  %s380_s5 = sand.u32 1, %s1944_s14  }
 0x4b6   : > { %v1238_v49 = vstv %s1237_s11  ;;  %v1233_v52 = vmul.f32 %v1232_v47, %v2164_v38  ;;  %s1385_s0 = sshll.u32 %s380_s5, 4  ;;  %s2239_s27 = scalar_lea.sflag [#allocation4], %s380_s5 }
 0x4b7   : > { %v1242_v55 = vstv %s1241_s21  ;;  %v1239_v56 = vmul.f32 %v1238_v49, %v2143_v23  ;;  %s382_s26 = scalar_lea.vmem [#allocation7], %s1385_s0  ;;  %s1958_s30 = smov [#allocation7]  }
 0x4b8   : > { %v1234_v57 = vadd.f32 %v1233_v52, %v1231_v48  ;;  %v1243_v58 = vmul.f32 %v1242_v55, %v2164_v38  ;;  %s1293_s28 = sshll.u32 %s382_s26, 4  ;;  %s1888_s18 = sshll.u32 %s1958_s30, 4  ;;  %s2237_s28 = int_to_ptr.vmem [resolvable:$true] %s1293_s28  ;;  %s1889_s18 = int_to_ptr.vmem [resolvable:$false] %s1888_s18 }
 0x4b9   : > { %s1884_s17 = scalar_lea.vmem %s2237_s28, 256  ;;  %s1890_s11 = scalar_lea.vmem %s1889_s18, 512 }
 0x4ba   : > { %v1235_v59 = vmul.f32 %v1234_v57, %v1144_v54  ;;  %v1244_v60 = vadd.f32 %v1243_v58, %v1239_v56  ;;  %p1885_p10 = scmp.ne.s32.totalorder %s2237_s28, %s1884_s17  ;;  %p1891_p11 = scmp.lt.s32.totalorder %s2237_s28, %s1889_s18 }
 0x4bb   : > { %p1892_p0 = scmp.lt.s32.totalorder %s1890_s11, %s1884_s17 }
 0x4bc   : > { %v1245_v62 = vmul.f32 %v1244_v60, %v1144_v54  ;;  %v1251_v63 = vrot.slane %v1235_v59, %v2174_v50  ;;  %p1886_p12 = pnand %p1885_p10, %p2054_p5 }
 0x4bd   : > { %p1893_p1 = por %p1892_p0, %p1891_p11 }
 0x4be   : > { %v1246_v0 = vadd.f32 %v1245_v62, %v1145_v61  ;;  %v1253_v1 = vmul.f32 %v1251_v63, %v2202_v53  ;;  %v1254_v2 = vmul.f32 %v1251_v63, %v2200_v51  ;;  %p1887_p8 = pneg %p1886_p12 }
 0x4c0   : > { %v1259_v23 = vrot.slane %v1246_v0, %v2174_v50  ;;  %p1894_p3 = pnand %p1893_p1, %p1887_p8 }
 0x4c2   : > { %v1261_v3 = vadd.f32 %v1259_v23, %v1253_v1  ;;  %v1262_v38 = vadd.f32 %v1259_v23, %v1254_v2 }
 0x4c4   : > { %v1393_v4 = vmul.f32 -1.442695, %v1261_v3  ;;  %v1394_v5 = vmul.f32 -1.442695, %v1262_v38 }
 0x4c6   : > { %1824 = vpow2.f32 %v1393_v4 }
 0x4c7   : > { %1826 = vpow2.f32 %v1394_v5 }
 0x4d3   : > { %v1825_v6 = vpop.eup %1824 }
 0x4d4   : > { %v1827_v7 = vpop.eup %1826  ;;  %v1269_v9 = vadd.f32 1.0, %v1825_v6 }
 0x4d5   : > { %v1270_v8 = vadd.f32 1.0, %v1827_v7 }
 0x4d6   : > { %1828 = vrcp.f32 %v1269_v9 }
 0x4d7   : > { %1830 = vrcp.f32 %v1270_v8 }
 0x4e3   : > { %v1829_v51 = vpop.eup %1828 }
 0x4e4   : > { %v1831_v50 = vpop.eup %1830  ;;  %v1275_v53 = vmul.f32 %v1829_v51, %v1261_v3 }
 0x4e5   : > { %v1276_v10 = vmul.f32 %v1831_v50, %v1262_v38 }
 0x4e6   : > { %1277 = vst [vmem:[%s382_s26] sm:$0xff] %v1275_v53 }
 0x4e7   : > { %1278 = vst [vmem:[%s382_s26 + $0x8] sm:$0xff] %v1276_v10 }
 0x4e8   : > { %1897 = shalt.err (!%p1894_p3)
}
 0x4e9   : > { %s1898_s21 = scalar_lea.hbm %s2235_s25, 256  ;;  %s1902_s4 = scalar_lea.hbm %s2289_s10, 512 }
 0x4ea   : > { %p1899_p2 = scmp.ne.s32.totalorder %s2235_s25, %s1898_s21  ;;  %p1903_p7 = scmp.lt.s32.totalorder %s2235_s25, %s2289_s10 }
 0x4eb   : > { %p1904_p6 = scmp.lt.s32.totalorder %s1902_s4, %s1898_s21 }
 0x4ec   : > { %p1900_p4 = pnand %p1899_p2, %p2054_p5 }
 0x4ed   : > { %p1905_p9 = por %p1904_p6, %p1903_p7 }
 0x4ee   : > { %p1901_p13 = pneg %p1900_p4 }
 0x4f0   : > { %p1906_p10 = pnand %p1905_p9, %p1901_p13 }
 0x4f2   : > { %1909 = shalt.err (!%p1906_p10)
}
 0x4f3   : > { %s1959_s0 = smov 128   ;;  %s1960_s1 = smov 8  }
 0x4f4   : > { %1752 = dma.vmem_to_hbm [thread:$0]  (%p2054_p5), %s2237_s28, 256, %s2235_s25, %s2239_s27, %s1959_s0, %s1959_s0, %s1960_s1  }
 0x4f5 PF: > { %p1769_p12 = scmp.ge.s32.totalorder %s1952_s16, 2  ;;  %s1308_s26 = sand.u32 1, %s1940_s13  }
 0x4f6   : > { %p2311_p8 = scmp.ne.s32.totalorder %s2298_s24, 0  ;;  %s1309_s12 = scalar_lea.sflag [#allocation4], %s1308_s26 }
 0x4f8   : > { %p1762_p11 = pnand %p1769_p12, %p2311_p8 }
 0x4fa   : > { %p1763_p0 = pneg %p1762_p11 }
 0x4fc   : > { %1935 = dma.done.wait (%p1763_p0), %s1309_s12, 256  }
 0x4fd   : > { %1937 = vsyncadd (%p1763_p0), %s1309_s12, 4294967040  ;;  %p22_p1 = scmp.ge.s32.totalorder %s2041_s19, 4   ;;  %s2312_s13 = smov %s1944_s14 }
 0x4fe   : > { %s2313_s14 = smov %s1948_s15  ;;  %s2314_s15 = smov %s2052_s22 }
 0x4ff   : > { %s2315_s16 = smov %s2041_s19  ;;  %24 = sbr.rel (!%p22_p1) target bundleno = 12 (0xc), region = 108 }
 0x504   :  { %1314 = vsyncpa [#allocation3], 1 }
 0x505   :  { %1316 = vsyncpa [#allocation3 + $0x1], 1 }
 0x506   :  { %1317 = vsyncpa [#allocation6], 1 }
 0x507   :  { %1318 = vsyncpa [#allocation4], 1 }
 0x508   :  { %1320 = vsyncpa [#allocation4 + $0x1], 1 }

</bundles_post_ra>
